<compile_context>
chip_gen: v6e
topology: v6e:2x2x1
jax: 0.10.0
libtpu: 0.0.40
codegen_flags: <defaults>
</compile_context>

<pallas_src>
import functools
import numpy as np
import jax
import jax.numpy as jnp
from jax.experimental import pallas as pl
from jax.experimental.pallas import tpu as pltpu

EPS = 1e-8
PAD_LOGIT = -30.0  # padding logit: sigmoid(-30) ~ 0, so padded heatmap pixels
                   # contribute ~0 to the unmasked focal term.


# ----------------------------------------------------------------------------
# Host-side GT generation (faithful numpy translation of the PyTorch helpers).
# ----------------------------------------------------------------------------
def rot2d_np(x, y, theta_deg, w, h):
    th = np.float32(np.pi * theta_deg / 180.0)
    R = np.array([[np.cos(th), np.sin(th)],
                  [-np.sin(th), np.cos(th)]], dtype=np.float32)
    center = np.array([[x], [y]], dtype=np.float32)
    corners_local = np.array([[-w / 2, w / 2, -w / 2, w / 2],
                              [-h / 2, -h / 2, h / 2, h / 2]], dtype=np.float32)
    return R @ corners_local + center  # (2, 4)


def gene_casual_gaussian(box, gaussian_map, scale):
    cx, cy, bw, bh, ang = box[1], box[2], box[3], box[4], box[5]
    corners = rot2d_np(cx, cy, ang, bw, bh) / scale
    centers = np.floor(np.array([[cx], [cy]], dtype=np.float32) / scale)
    u = corners - centers
    cov = (u @ u.T) / (4.0 - 1.0)
    cov_inv = np.linalg.inv(cov).astype(np.float32)
    W, H = gaussian_map.shape
    ii, jj = np.meshgrid(np.arange(W), np.arange(W), indexing="ij")
    xy = np.stack([ii.reshape(-1), jj.reshape(-1)], axis=0).astype(np.float32)
    d = xy - centers
    expo = -np.sum((cov_inv @ d) * d, axis=0)
    value = np.exp(expo).reshape(W, H).T.astype(np.float32)
    old_mask = (value < gaussian_map).astype(np.float32)
    gaussian_map *= old_mask
    gaussian_map += value * (1.0 - old_mask)


def gene_multi_scale_gt(boxes, scale):
    width = int(320 / scale)
    gt_map = np.zeros((8, width, width), dtype=np.float32)
    gt_mask = np.zeros((width, width), dtype=np.float32)
    gauss = np.zeros((width, width), dtype=np.float32)
    for k in range(boxes.shape[0]):
        lcx = int(boxes[k, 2] / scale)
        lcy = int(boxes[k, 1] / scale)
        gt_mask[lcx, lcy] = 1.0
        gene_casual_gaussian(boxes[k], gauss, scale)
        gt_map[0] = gauss  # gaussian peak is exactly exp(0)=1.0 at box centers
        gt_map[1, lcx, lcy] = boxes[k, 1] - scale * lcy
        gt_map[2, lcx, lcy] = boxes[k, 2] - scale * lcx
        gt_map[3, lcx, lcy] = boxes[k, 3]
        gt_map[4, lcx, lcy] = boxes[k, 4]
        ang = boxes[k, 5]
        gt_map[5, lcx, lcy] = 0.0 if ang <= 0 else 1.0
        gt_map[6, lcx, lcy] = abs(ang)
        gt_map[7, lcx, lcy] = 1.0
    return gt_map, gt_mask


# ----------------------------------------------------------------------------
# In-kernel math helpers.
# ----------------------------------------------------------------------------
def _recip(x):
    # EUP approximate reciprocal + one Newton step (~f32 accuracy, no slow divide).
    inv = pl.reciprocal(x, approx=True)
    return inv * (2.0 - x * inv)


def _sigmoid_stable(x):
    e = jnp.exp(-jnp.abs(x))
    return jnp.where(x >= 0.0, 1.0, e) * _recip(1.0 + e)


def _smooth_l1(d):
    a = jnp.abs(d)
    return jnp.where(a < 1.0, 0.5 * d * d, a - 0.5)


def _bce_with_logits(x, y):
    # max(x,0) - x*y + softplus(-|x|)
    return jnp.maximum(x, 0.0) - x * y + jnp.log(1.0 + jnp.exp(-jnp.abs(x)))


# ----------------------------------------------------------------------------
# Pallas kernel: one batch tile per grid step.
#   dense channel-0 heatmap  -> focal term, slab-chunked running accumulation
#   gathered peak pixels     -> offset / size / bin / orientation / cls terms
# ----------------------------------------------------------------------------
def fusion_loss_kernel(nvalid_ref, pred_ref, gt_ref, ppk_ref, gpk_ref, pmask_ref,
                       out_ref, *, scale, b_tile, n_slabs, slab_unroll,
                       batch_unroll):
    blk = pl.program_id(0)
    n_valid = nvalid_ref[0]
    lane = jax.lax.broadcasted_iota(jnp.int32, (1, 128), 1)

    def per_batch(lb, row_acc):
        # Batches past the valid prefix (original loop `break`s) contribute 0.
        valid = (blk * b_tile + lb < n_valid).astype(jnp.float32)

        b_pred = pred_ref.at[lb]   # (Wp, 128) ref view, no load
        b_gt = gt_ref.at[lb]

        # --- focal (heatmap) term: stream (8,128) slabs, carry 3 accumulators ---
        def slab(s, carry):
            acc_p, acc_n, acc_c = carry
            off = pl.multiple_of(s * 8, 8)
            x0 = b_pred[pl.ds(off, 8), :]
            gh = b_gt[pl.ds(off, 8), :]
            e0 = jnp.exp(-jnp.abs(x0))
            inv = _recip(1.0 + e0)
            lp0 = jnp.log(1.0 + e0)                           # softplus(-|x0|)
            ph = jnp.where(x0 >= 0.0, 1.0, e0) * inv          # sigmoid(x0)
            log_ph = jnp.where(x0 >= 0.0, -lp0, x0 - lp0)     # log sigmoid
            log_1mph = jnp.where(x0 >= 0.0, -x0 - lp0, -lp0)  # log(1 - sigmoid)
            pos = (gh == 1.0).astype(jnp.float32)   # gaussian peak exactly 1.0
            neg = (gh < 1.0).astype(jnp.float32)
            omg = 1.0 - gh
            neg_w = omg * omg
            neg_w = neg_w * neg_w                   # (1-gh)^4
            omp = 1.0 - ph
            return (acc_p + log_ph * omp * omp * pos,
                    acc_n + log_1mph * ph * ph * neg_w * neg,
                    acc_c + pos)

        z = jnp.zeros((8, 128), jnp.float32)
        acc_p, acc_n, acc_c = jax.lax.fori_loop(0, n_slabs, slab, (z, z, z),
                                                unroll=slab_unroll)
        pos_loss = jnp.sum(acc_p)
        neg_loss = jnp.sum(acc_n)
        num_pos = jnp.sum(acc_c)

        # --- masked channels (1..7): tiny gathered peak tiles ---
        pp = ppk_ref[lb]     # (8, Kp)
        pg = gpk_ref[lb]     # (8, Kp)
        pm = pmask_ref[lb]   # (1, Kp), 1.0 at real peaks, 0 on padding

        off_sum = jnp.sum(
            (_smooth_l1(scale * _sigmoid_stable(pp[1:2]) - pg[1:2]) +
             _smooth_l1(scale * _sigmoid_stable(pp[2:3]) - pg[2:3])) * pm)
        size_sum = jnp.sum(
            (_smooth_l1(pp[3:4] - pg[3:4]) + _smooth_l1(pp[4:5] - pg[4:5])) * pm)
        bin_sum = jnp.sum(_bce_with_logits(pp[5:6], pg[5:6]) * pm)
        orient_sum = jnp.sum(
            _smooth_l1(180.0 * _sigmoid_stable(pp[6:7]) - pg[6:7]) * pm)
        cls_sum = jnp.sum(_bce_with_logits(pp[7:8], pg[7:8]) * pm)

        focal = jnp.where(num_pos == 0.0, -neg_loss,
                          -(pos_loss + neg_loss) / jnp.maximum(num_pos, 1.0))
        l_heat = focal + EPS
        l_off = 0.1 * (off_sum + EPS)
        l_size = 0.1 * (size_sum + EPS)
        l_bin = 0.1 * bin_sum
        l_orient = 0.01 * orient_sum
        l_cls = 0.1 * (cls_sum + EPS)
        l_total = l_heat + l_off + l_size + l_bin + l_orient + l_cls

        row = row_acc
        for idx, v in enumerate(
                (l_total, l_heat, l_off, l_size, l_bin, l_orient, l_cls)):
            row = row + jnp.where(lane == idx, v * valid, 0.0)
        return row

    out_ref[0] = jax.lax.fori_loop(0, b_tile, per_batch,
                                   jnp.zeros((1, 128), jnp.float32),
                                   unroll=batch_unroll)


def fusion_loss_forward(prediction, gt_maps, valid, scale, max_peaks=128):
    """valid must be a *prefix* 0/1 mask (the original loop `break`s at the
    first empty gt_mask); only its sum is used by the kernel.
    max_peaks must be >= the number of boxes in any batch."""
    bs, C, W, _ = prediction.shape
    assert C == 8
    P = W * W

    pred_flat = prediction.reshape(bs, C, P).astype(jnp.float32)
    gt_flat = gt_maps.reshape(bs, C, P).astype(jnp.float32)
    # gt channel 7 is written identically to gt_mask in gene_multiScaleGTmap.
    mask_flat = gt_flat[:, 7, :]

    # --- dense heatmap (channel 0): lane-dense (Wp,128), Wp multiple of 8 ---
    SLAB = 8 * 128
    Pp = ((P + SLAB - 1) // SLAB) * SLAB
    pad = Pp - P
    pred_hm = pred_flat[:, 0, :]
    gt_hm = gt_flat[:, 0, :]
    if pad:
        pred_hm = jnp.pad(pred_hm, ((0, 0), (0, pad)), constant_values=PAD_LOGIT)
        gt_hm = jnp.pad(gt_hm, ((0, 0), (0, pad)))
    Wp = Pp // 128
    pred_hm = pred_hm.reshape(bs, Wp, 128)
    gt_hm = gt_hm.reshape(bs, Wp, 128)

    # --- masked channels: gather the (few) peak pixels once, outside the kernel ---
    k = int(min(max_peaks, P))
    peak_val, peak_idx = jax.lax.top_k(mask_flat, k)          # (bs, k) each
    gidx = jnp.broadcast_to(peak_idx[:, None, :], (bs, C, k))
    peak_pred = jnp.take_along_axis(pred_flat, gidx, axis=2)   # (bs, 8, k)
    peak_gt = jnp.take_along_axis(gt_flat, gidx, axis=2)
    Kp = ((k + 127) // 128) * 128
    if Kp != k:
        peak_pred = jnp.pad(peak_pred, ((0, 0), (0, 0), (0, Kp - k)))
        peak_gt = jnp.pad(peak_gt, ((0, 0), (0, 0), (0, Kp - k)))
        peak_val = jnp.pad(peak_val, ((0, 0), (0, Kp - k)))
    peak_mask = peak_val.reshape(bs, 1, Kp)

    # --- batch tile: amortize per-step overhead, stay inside VMEM, keep >= 2
    #     grid steps so v7x's second TensorCore is used. ---
    bytes_per_batch = (2 * Wp * 128 + 2 * 8 * Kp + Kp) * 4
    vmem_budget = 40 << 20                       # safe on v5e/v6e/v7x
    cap = max(1, vmem_budget // (2 * bytes_per_batch))   # x2: double buffering
    b_tile = int(min(8, cap, max(1, (bs + 1) // 2)))
    padded_bs = ((bs + b_tile - 1) // b_tile) * b_tile
    if padded_bs != bs:
        bpad = padded_bs - bs
        padb = lambda a: jnp.pad(a, ((0, bpad),) + ((0, 0),) * (a.ndim - 1))
        pred_hm, gt_hm = padb(pred_hm), padb(gt_hm)
        peak_pred, peak_gt, peak_mask = padb(peak_pred), padb(peak_gt), padb(peak_mask)
    nb = padded_bs // b_tile
    n_slabs = Wp // 8

    n_valid = jnp.sum(valid.astype(jnp.int32)).reshape(1)

    kern = functools.partial(
        fusion_loss_kernel, scale=float(scale), b_tile=b_tile, n_slabs=n_slabs,
        slab_unroll=bool(n_slabs <= 8), batch_unroll=bool(b_tile <= 4))

    cp_kwargs = dict(dimension_semantics=("parallel",))
    vmem_need = 2 * b_tile * bytes_per_batch + (2 << 20)
    if vmem_need > (16 << 20):
        # only raise the scoped limit when the tile actually needs it (large W);
        # keep it under v7x's 64 MiB physical VMEM.
        cp_kwargs["vmem_limit_bytes"] = int(min(max(vmem_need, 32 << 20), 60 << 20))

    imap3 = lambda b, nv: (b, 0, 0)
    out = pl.pallas_call(
        kern,
        out_shape=jax.ShapeDtypeStruct((nb, 1, 128), jnp.float32),
        grid_spec=pltpu.PrefetchScalarGridSpec(
            num_scalar_prefetch=1,
            grid=(nb,),
            in_specs=[
                pl.BlockSpec((b_tile, Wp, 128), imap3),   # dense pred heatmap
                pl.BlockSpec((b_tile, Wp, 128), imap3),   # dense gt heatmap
                pl.BlockSpec((b_tile, 8, Kp), imap3),     # peak pred (all channels)
                pl.BlockSpec((b_tile, 8, Kp), imap3),     # peak gt
                pl.BlockSpec((b_tile, 1, Kp), imap3),     # peak validity mask
            ],
            out_specs=pl.BlockSpec((1, 1, 128), imap3),
        ),
        compiler_params=pltpu.CompilerParams(**cp_kwargs),
    )(n_valid, pred_hm, gt_hm, peak_pred, peak_gt, peak_mask)

    # Per-grid-step rows -> final 10-element loss vector (indices 7..9 stay 0).
    loss_arr = jnp.sum(out[:, 0, :10], axis=0) / bs
    return loss_arr.reshape(1, 10)
    # TODO(synk): optionally store the dense heatmap in bf16 in HBM (upcast
    # in-kernel) to halve DMA bytes on v5e at large W, after re-validating
    # against the tolerance.


# ----------------------------------------------------------------------------
# Pure-numpy reference (same math, PyTorch dense-mask formulation).
# ----------------------------------------------------------------------------
def reference_loss(prediction, gt_maps, gt_masks, valid, scale):
    prediction = np.asarray(prediction, dtype=np.float64)
    gt_maps = np.asarray(gt_maps, dtype=np.float64)
    gt_masks = np.asarray(gt_masks, dtype=np.float64)
    bs = prediction.shape[0]
    loss = np.zeros((1, 10), dtype=np.float64)

    def sigm(x):
        return 1.0 / (1.0 + np.exp(-x))

    def sl1(d):
        a = np.abs(d)
        return np.where(a < 1.0, 0.5 * d * d, a - 0.5)

    def bce(x, y):
        return np.maximum(x, 0.0) - x * y + np.log(1.0 + np.exp(-np.abs(x)))

    for i in range(bs):
        if valid[i] == 0:
            break
        pred, gt, mask = prediction[i], gt_maps[i], gt_masks[i]
        ph, gh = sigm(pred[0]), gt[0]
        pos = (gh == 1.0).astype(np.float64)
        neg = (gh < 1.0).astype(np.float64)
        pos_l = np.sum(np.log(ph + EPS) * (1 - ph) ** 2 * pos)
        neg_l = np.sum(np.log(1 - ph + EPS) * ph ** 2 * (1 - gh) ** 4 * neg)
        np_pos = pos.sum()
        focal = -neg_l if np_pos == 0 else -(pos_l + neg_l) / np_pos
        loss[0, 1] += focal + EPS
        loss[0, 2] += 0.1 * (np.sum(sl1(scale * sigm(pred[1:3]) - gt[1:3]) * mask[None]) + EPS)
        loss[0, 3] += 0.1 * (np.sum(sl1(pred[3:5] - gt[3:5]) * mask[None]) + EPS)
        loss[0, 4] += 0.1 * np.sum(bce(pred[5], gt[5]) * mask)
        loss[0, 5] += 0.01 * np.sum(sl1(180.0 * sigm(pred[6]) - gt[6]) * mask)
        loss[0, 6] += 0.1 * (np.sum(bce(pred[7], gt[7]) * mask) + EPS)
    loss[0, 0] = loss[0, 1:].sum()
    return loss / bs


# ----------------------------------------------------------------------------
if __name__ == "__main__":
    bs, C, W = 2, 8, 32
    scale = 320.0 / W  # 10.0

    key = jax.random.PRNGKey(0)
    prediction = jax.random.normal(key, (bs, C, W, W), dtype=jnp.float32)

    # Deterministic ground-truth boxes: [id, center_x, center_y, width, height, angle]
    gt_boxes = [
        np.array([[0, 100.0, 150.0, 20.0, 40.0, 30.0],
                  [1, 200.0, 50.0, 30.0, 15.0, -45.0]], dtype=np.float32),
        np.array([[0, 60.0, 250.0, 25.0, 25.0, 0.0]], dtype=np.float32),
    ]

    gt_maps_np, gt_masks_np = [], []
    for b in range(bs):
        gm, gmask = gene_multi_scale_gt(gt_boxes[b], scale)
        gt_maps_np.append(gm)
        gt_masks_np.append(gmask)
    gt_maps_np = np.stack(gt_maps_np)
    gt_masks_np = np.stack(gt_masks_np)

    # Emulate the `if gt_mask.sum() == 0: break` early exit: only the prefix of
    # batches before the first empty mask contributes (valid is a prefix mask).
    valid_np = np.zeros(bs, dtype=np.int32)
    for i in range(bs):
        if gt_masks_np[i].sum() == 0:
            break
        valid_np[i] = 1

    gt_maps = jnp.asarray(gt_maps_np)
    valid = jnp.asarray(valid_np)

    loss_arr = fusion_loss_forward(prediction, gt_maps, valid, scale)
    loss_arr = jax.block_until_ready(loss_arr)

    ref = reference_loss(np.asarray(prediction), gt_maps_np, gt_masks_np,
                         valid_np, scale)
    np.testing.assert_allclose(np.asarray(loss_arr), ref, rtol=2e-3, atol=1e-3)

    # TODO(synk): use_hungarian_match path (scipy linear_sum_assignment + peak
    # pruning) and the NaN-fallback / pdb / logger branches are not translated.
    print("KERNEL_OK")
</pallas_src>

<mosaic_0001>
module attributes {stable_mosaic.version = 11 : i64} {
  func.func @fusion_loss_kernel(%arg0: i32, %arg1: memref<1xi32, #tpu.memory_space<smem>>, %arg2: memref<1x8x128xf32, #tpu.memory_space<vmem>>, %arg3: memref<1x8x128xf32, #tpu.memory_space<vmem>>, %arg4: memref<1x8x128xf32, #tpu.memory_space<vmem>>, %arg5: memref<1x8x128xf32, #tpu.memory_space<vmem>>, %arg6: memref<1x1x128xf32, #tpu.memory_space<vmem>>, %arg7: memref<1x1x128xf32, #tpu.memory_space<vmem>>) attributes {dimension_semantics = [#tpu.dimension_semantics<parallel>], iteration_bounds = array<i64: 2>, scalar_prefetch = 1 : i64, scratch_operands = 0 : i64, tpu.core_type = #tpu.core_type<tc>, window_params = [{transform_indices = @transform_0, window_bounds = array<i64: 1, 8, 128>}, {transform_indices = @transform_1, window_bounds = array<i64: 1, 8, 128>}, {transform_indices = @transform_2, window_bounds = array<i64: 1, 8, 128>}, {transform_indices = @transform_3, window_bounds = array<i64: 1, 8, 128>}, {transform_indices = @transform_4, window_bounds = array<i64: 1, 1, 128>}, {transform_indices = @transform_5, window_bounds = array<i64: 1, 1, 128>}]} {
    %c0 = arith.constant 0 : index
    %0 = memref.load %arg1[%c0] : memref<1xi32, #tpu.memory_space<smem>>
    %1 = tpu.iota {dimensions = array<i32: 1>} : vector<1x128xi32>
    %cst = arith.constant 0.000000e+00 : f32
    %2 = vector.broadcast %cst : f32 to vector<1x128xf32>
    %c0_i32 = arith.constant 0 : i32
    %c1_i32 = arith.constant 1 : i32
    %3 = arith.muli %arg0, %c1_i32 : i32
    %4 = arith.addi %3, %c0_i32 : i32
    %5 = arith.cmpi slt, %4, %0 : i32
    %6 = arith.extui %5 : i1 to i32
    %7 = arith.sitofp %6 : i32 to f32
    %cst_0 = arith.constant 0.000000e+00 : f32
    %8 = vector.broadcast %cst_0 : f32 to vector<8x128xf32>
    %c0_i32_1 = arith.constant 0 : i32
    %c8_i32 = arith.constant 8 : i32
    %9 = arith.muli %c0_i32_1, %c8_i32 : i32
    %10 = tpu.assume_multiple %9, 8 : i32
    %c0_i32_2 = arith.constant 0 : i32
    %c0_i32_3 = arith.constant 0 : i32
    %11 = tpu.memref_slice %arg2[%c0_i32, %c0_i32_2, %c0_i32_3] : memref<1x8x128xf32, #tpu.memory_space<vmem>> -> memref<1x8x128xf32, #tpu.memory_space<vmem>>
    %12 = tpu.memref_squeeze %11 : memref<1x8x128xf32, #tpu.memory_space<vmem>> -> memref<8x128xf32, #tpu.memory_space<vmem>>
    %13 = arith.index_cast %10 : i32 to index
    %c0_4 = arith.constant 0 : index
    %14 = vector.load %12[%13, %c0_4] : memref<8x128xf32, #tpu.memory_space<vmem>>, vector<8x128xf32>
    %c0_i32_5 = arith.constant 0 : i32
    %c0_i32_6 = arith.constant 0 : i32
    %15 = tpu.memref_slice %arg3[%c0_i32, %c0_i32_5, %c0_i32_6] : memref<1x8x128xf32, #tpu.memory_space<vmem>> -> memref<1x8x128xf32, #tpu.memory_space<vmem>>
    %16 = tpu.memref_squeeze %15 : memref<1x8x128xf32, #tpu.memory_space<vmem>> -> memref<8x128xf32, #tpu.memory_space<vmem>>
    %17 = arith.index_cast %10 : i32 to index
    %c0_7 = arith.constant 0 : index
    %18 = vector.load %16[%17, %c0_7] : memref<8x128xf32, #tpu.memory_space<vmem>>, vector<8x128xf32>
    %19 = math.absf %14 : vector<8x128xf32>
    %cst_8 = arith.constant 0.000000e+00 : f32
    %20 = vector.broadcast %cst_8 : f32 to vector<8x128xf32>
    %21 = arith.subf %20, %19 : vector<8x128xf32>
    %22 = math.exp %21 : vector<8x128xf32>
    %cst_9 = arith.constant 1.000000e+00 : f32
    %23 = vector.broadcast %cst_9 : f32 to vector<8x128xf32>
    %24 = arith.addf %23, %22 : vector<8x128xf32>
    %25 = tpu.reciprocal %24 {approx = true} : vector<8x128xf32> -> vector<8x128xf32>
    %26 = arith.mulf %24, %25 : vector<8x128xf32>
    %cst_10 = arith.constant 2.000000e+00 : f32
    %27 = vector.broadcast %cst_10 : f32 to vector<8x128xf32>
    %28 = arith.subf %27, %26 : vector<8x128xf32>
    %29 = arith.mulf %25, %28 : vector<8x128xf32>
    %cst_11 = arith.constant 1.000000e+00 : f32
    %30 = vector.broadcast %cst_11 : f32 to vector<8x128xf32>
    %31 = arith.addf %30, %22 : vector<8x128xf32>
    %32 = math.log %31 : vector<8x128xf32>
    %cst_12 = arith.constant 0.000000e+00 : f32
    %33 = vector.broadcast %cst_12 : f32 to vector<8x128xf32>
    %34 = arith.cmpf oge, %14, %33 : vector<8x128xf32>
    %cst_13 = arith.constant 1.000000e+00 : f32
    %35 = vector.broadcast %cst_13 : f32 to vector<8x128xf32>
    %36 = arith.select %34, %35, %22 : vector<8x128xi1>, vector<8x128xf32>
    %37 = arith.mulf %36, %29 : vector<8x128xf32>
    %cst_14 = arith.constant 0.000000e+00 : f32
    %38 = vector.broadcast %cst_14 : f32 to vector<8x128xf32>
    %39 = arith.cmpf oge, %14, %38 : vector<8x128xf32>
    %cst_15 = arith.constant 0.000000e+00 : f32
    %40 = vector.broadcast %cst_15 : f32 to vector<8x128xf32>
    %41 = arith.subf %40, %32 : vector<8x128xf32>
    %42 = arith.subf %14, %32 : vector<8x128xf32>
    %43 = arith.select %39, %41, %42 : vector<8x128xi1>, vector<8x128xf32>
    %cst_16 = arith.constant 0.000000e+00 : f32
    %44 = vector.broadcast %cst_16 : f32 to vector<8x128xf32>
    %45 = arith.cmpf oge, %14, %44 : vector<8x128xf32>
    %cst_17 = arith.constant 0.000000e+00 : f32
    %46 = vector.broadcast %cst_17 : f32 to vector<8x128xf32>
    %47 = arith.subf %46, %14 : vector<8x128xf32>
    %48 = arith.subf %47, %32 : vector<8x128xf32>
    %cst_18 = arith.constant 0.000000e+00 : f32
    %49 = vector.broadcast %cst_18 : f32 to vector<8x128xf32>
    %50 = arith.subf %49, %32 : vector<8x128xf32>
    %51 = arith.select %45, %48, %50 : vector<8x128xi1>, vector<8x128xf32>
    %cst_19 = arith.constant 1.000000e+00 : f32
    %52 = vector.broadcast %cst_19 : f32 to vector<8x128xf32>
    %53 = arith.cmpf oeq, %18, %52 : vector<8x128xf32>
    %54 = arith.extui %53 : vector<8x128xi1> to vector<8x128xi32>
    %55 = arith.sitofp %54 : vector<8x128xi32> to vector<8x128xf32>
    %cst_20 = arith.constant 1.000000e+00 : f32
    %56 = vector.broadcast %cst_20 : f32 to vector<8x128xf32>
    %57 = arith.cmpf olt, %18, %56 : vector<8x128xf32>
    %58 = arith.extui %57 : vector<8x128xi1> to vector<8x128xi32>
    %59 = arith.sitofp %58 : vector<8x128xi32> to vector<8x128xf32>
    %cst_21 = arith.constant 1.000000e+00 : f32
    %60 = vector.broadcast %cst_21 : f32 to vector<8x128xf32>
    %61 = arith.subf %60, %18 : vector<8x128xf32>
    %62 = arith.mulf %61, %61 : vector<8x128xf32>
    %63 = arith.mulf %62, %62 : vector<8x128xf32>
    %cst_22 = arith.constant 1.000000e+00 : f32
    %64 = vector.broadcast %cst_22 : f32 to vector<8x128xf32>
    %65 = arith.subf %64, %37 : vector<8x128xf32>
    %66 = arith.mulf %43, %65 : vector<8x128xf32>
    %67 = arith.mulf %66, %65 : vector<8x128xf32>
    %68 = arith.mulf %67, %55 : vector<8x128xf32>
    %69 = arith.addf %8, %68 : vector<8x128xf32>
    %70 = arith.mulf %51, %37 : vector<8x128xf32>
    %71 = arith.mulf %70, %37 : vector<8x128xf32>
    %72 = arith.mulf %71, %63 : vector<8x128xf32>
    %73 = arith.mulf %72, %59 : vector<8x128xf32>
    %74 = arith.addf %8, %73 : vector<8x128xf32>
    %75 = arith.addf %8, %55 : vector<8x128xf32>
    %c1_i32_23 = arith.constant 1 : i32
    %76 = vector.shape_cast %69 : vector<8x128xf32> to vector<1x8x128xf32>
    %cst_24 = arith.constant dense<0.000000e+00> : vector<1xf32>
    %77 = vector.multi_reduction <add>, %76, %cst_24 [1, 2] : vector<1x8x128xf32> to vector<1xf32>
    %78 = vector.shape_cast %77 : vector<1xf32> to vector<1x1x1xf32>
    %79 = vector.extract %78[0, 0, 0] : f32 from vector<1x1x1xf32>
    %80 = vector.shape_cast %74 : vector<8x128xf32> to vector<1x8x128xf32>
    %cst_25 = arith.constant dense<0.000000e+00> : vector<1xf32>
    %81 = vector.multi_reduction <add>, %80, %cst_25 [1, 2] : vector<1x8x128xf32> to vector<1xf32>
    %82 = vector.shape_cast %81 : vector<1xf32> to vector<1x1x1xf32>
    %83 = vector.extract %82[0, 0, 0] : f32 from vector<1x1x1xf32>
    %84 = vector.shape_cast %75 : vector<8x128xf32> to vector<1x8x128xf32>
    %cst_26 = arith.constant dense<0.000000e+00> : vector<1xf32>
    %85 = vector.multi_reduction <add>, %84, %cst_26 [1, 2] : vector<1x8x128xf32> to vector<1xf32>
    %86 = vector.shape_cast %85 : vector<1xf32> to vector<1x1x1xf32>
    %87 = vector.extract %86[0, 0, 0] : f32 from vector<1x1x1xf32>
    %88 = arith.index_cast %c0_i32 : i32 to index
    %c0_27 = arith.constant 0 : index
    %c0_28 = arith.constant 0 : index
    %89 = vector.load %arg4[%88, %c0_27, %c0_28] : memref<1x8x128xf32, #tpu.memory_space<vmem>>, vector<1x8x128xf32>
    %90 = vector.shape_cast %89 : vector<1x8x128xf32> to vector<8x128xf32>
    %91 = arith.index_cast %c0_i32 : i32 to index
    %c0_29 = arith.constant 0 : index
    %c0_30 = arith.constant 0 : index
    %92 = vector.load %arg5[%91, %c0_29, %c0_30] : memref<1x8x128xf32, #tpu.memory_space<vmem>>, vector<1x8x128xf32>
    %93 = vector.shape_cast %92 : vector<1x8x128xf32> to vector<8x128xf32>
    %94 = arith.index_cast %c0_i32 : i32 to index
    %c0_31 = arith.constant 0 : index
    %c0_32 = arith.constant 0 : index
    %95 = vector.load %arg6[%94, %c0_31, %c0_32] : memref<1x1x128xf32, #tpu.memory_space<vmem>>, vector<1x1x128xf32>
    %96 = vector.shape_cast %95 : vector<1x1x128xf32> to vector<1x128xf32>
    %97 = vector.extract_strided_slice %90 {offsets = [1, 0], sizes = [1, 128], strides = [1, 1]} : vector<8x128xf32> to vector<1x128xf32>
    %98 = math.absf %97 : vector<1x128xf32>
    %cst_33 = arith.constant 0.000000e+00 : f32
    %99 = vector.broadcast %cst_33 : f32 to vector<1x128xf32>
    %100 = arith.subf %99, %98 : vector<1x128xf32>
    %101 = math.exp %100 : vector<1x128xf32>
    %cst_34 = arith.constant 0.000000e+00 : f32
    %102 = vector.broadcast %cst_34 : f32 to vector<1x128xf32>
    %103 = arith.cmpf oge, %97, %102 : vector<1x128xf32>
    %cst_35 = arith.constant 1.000000e+00 : f32
    %104 = vector.broadcast %cst_35 : f32 to vector<1x128xf32>
    %105 = arith.select %103, %104, %101 : vector<1x128xi1>, vector<1x128xf32>
    %cst_36 = arith.constant 1.000000e+00 : f32
    %106 = vector.broadcast %cst_36 : f32 to vector<1x128xf32>
    %107 = arith.addf %106, %101 : vector<1x128xf32>
    %108 = tpu.reciprocal %107 {approx = true} : vector<1x128xf32> -> vector<1x128xf32>
    %109 = arith.mulf %107, %108 : vector<1x128xf32>
    %cst_37 = arith.constant 2.000000e+00 : f32
    %110 = vector.broadcast %cst_37 : f32 to vector<1x128xf32>
    %111 = arith.subf %110, %109 : vector<1x128xf32>
    %112 = arith.mulf %108, %111 : vector<1x128xf32>
    %113 = arith.mulf %105, %112 : vector<1x128xf32>
    %cst_38 = arith.constant 1.000000e+01 : f32
    %114 = vector.broadcast %cst_38 : f32 to vector<1x128xf32>
    %115 = arith.mulf %114, %113 : vector<1x128xf32>
    %116 = vector.extract_strided_slice %93 {offsets = [1, 0], sizes = [1, 128], strides = [1, 1]} : vector<8x128xf32> to vector<1x128xf32>
    %117 = arith.subf %115, %116 : vector<1x128xf32>
    %118 = math.absf %117 : vector<1x128xf32>
    %cst_39 = arith.constant 1.000000e+00 : f32
    %119 = vector.broadcast %cst_39 : f32 to vector<1x128xf32>
    %120 = arith.cmpf olt, %118, %119 : vector<1x128xf32>
    %cst_40 = arith.constant 5.000000e-01 : f32
    %121 = vector.broadcast %cst_40 : f32 to vector<1x128xf32>
    %122 = arith.mulf %121, %117 : vector<1x128xf32>
    %123 = arith.mulf %122, %117 : vector<1x128xf32>
    %cst_41 = arith.constant 5.000000e-01 : f32
    %124 = vector.broadcast %cst_41 : f32 to vector<1x128xf32>
    %125 = arith.subf %118, %124 : vector<1x128xf32>
    %126 = arith.select %120, %123, %125 : vector<1x128xi1>, vector<1x128xf32>
    %127 = vector.extract_strided_slice %90 {offsets = [2, 0], sizes = [1, 128], strides = [1, 1]} : vector<8x128xf32> to vector<1x128xf32>
    %128 = math.absf %127 : vector<1x128xf32>
    %cst_42 = arith.constant 0.000000e+00 : f32
    %129 = vector.broadcast %cst_42 : f32 to vector<1x128xf32>
    %130 = arith.subf %129, %128 : vector<1x128xf32>
    %131 = math.exp %130 : vector<1x128xf32>
    %cst_43 = arith.constant 0.000000e+00 : f32
    %132 = vector.broadcast %cst_43 : f32 to vector<1x128xf32>
    %133 = arith.cmpf oge, %127, %132 : vector<1x128xf32>
    %cst_44 = arith.constant 1.000000e+00 : f32
    %134 = vector.broadcast %cst_44 : f32 to vector<1x128xf32>
    %135 = arith.select %133, %134, %131 : vector<1x128xi1>, vector<1x128xf32>
    %cst_45 = arith.constant 1.000000e+00 : f32
    %136 = vector.broadcast %cst_45 : f32 to vector<1x128xf32>
    %137 = arith.addf %136, %131 : vector<1x128xf32>
    %138 = tpu.reciprocal %137 {approx = true} : vector<1x128xf32> -> vector<1x128xf32>
    %139 = arith.mulf %137, %138 : vector<1x128xf32>
    %cst_46 = arith.constant 2.000000e+00 : f32
    %140 = vector.broadcast %cst_46 : f32 to vector<1x128xf32>
    %141 = arith.subf %140, %139 : vector<1x128xf32>
    %142 = arith.mulf %138, %141 : vector<1x128xf32>
    %143 = arith.mulf %135, %142 : vector<1x128xf32>
    %cst_47 = arith.constant 1.000000e+01 : f32
    %144 = vector.broadcast %cst_47 : f32 to vector<1x128xf32>
    %145 = arith.mulf %144, %143 : vector<1x128xf32>
    %146 = vector.extract_strided_slice %93 {offsets = [2, 0], sizes = [1, 128], strides = [1, 1]} : vector<8x128xf32> to vector<1x128xf32>
    %147 = arith.subf %145, %146 : vector<1x128xf32>
    %148 = math.absf %147 : vector<1x128xf32>
    %cst_48 = arith.constant 1.000000e+00 : f32
    %149 = vector.broadcast %cst_48 : f32 to vector<1x128xf32>
    %150 = arith.cmpf olt, %148, %149 : vector<1x128xf32>
    %cst_49 = arith.constant 5.000000e-01 : f32
    %151 = vector.broadcast %cst_49 : f32 to vector<1x128xf32>
    %152 = arith.mulf %151, %147 : vector<1x128xf32>
    %153 = arith.mulf %152, %147 : vector<1x128xf32>
    %cst_50 = arith.constant 5.000000e-01 : f32
    %154 = vector.broadcast %cst_50 : f32 to vector<1x128xf32>
    %155 = arith.subf %148, %154 : vector<1x128xf32>
    %156 = arith.select %150, %153, %155 : vector<1x128xi1>, vector<1x128xf32>
    %157 = arith.addf %126, %156 : vector<1x128xf32>
    %158 = arith.mulf %157, %96 : vector<1x128xf32>
    %159 = vector.shape_cast %158 : vector<1x128xf32> to vector<1x1x128xf32>
    %cst_51 = arith.constant dense<0.000000e+00> : vector<1xf32>
    %160 = vector.multi_reduction <add>, %159, %cst_51 [1, 2] : vector<1x1x128xf32> to vector<1xf32>
    %161 = vector.shape_cast %160 : vector<1xf32> to vector<1x1x1xf32>
    %162 = vector.extract %161[0, 0, 0] : f32 from vector<1x1x1xf32>
    %163 = vector.extract_strided_slice %90 {offsets = [3, 0], sizes = [1, 128], strides = [1, 1]} : vector<8x128xf32> to vector<1x128xf32>
    %164 = vector.extract_strided_slice %93 {offsets = [3, 0], sizes = [1, 128], strides = [1, 1]} : vector<8x128xf32> to vector<1x128xf32>
    %165 = arith.subf %163, %164 : vector<1x128xf32>
    %166 = math.absf %165 : vector<1x128xf32>
    %cst_52 = arith.constant 1.000000e+00 : f32
    %167 = vector.broadcast %cst_52 : f32 to vector<1x128xf32>
    %168 = arith.cmpf olt, %166, %167 : vector<1x128xf32>
    %cst_53 = arith.constant 5.000000e-01 : f32
    %169 = vector.broadcast %cst_53 : f32 to vector<1x128xf32>
    %170 = arith.mulf %169, %165 : vector<1x128xf32>
    %171 = arith.mulf %170, %165 : vector<1x128xf32>
    %cst_54 = arith.constant 5.000000e-01 : f32
    %172 = vector.broadcast %cst_54 : f32 to vector<1x128xf32>
    %173 = arith.subf %166, %172 : vector<1x128xf32>
    %174 = arith.select %168, %171, %173 : vector<1x128xi1>, vector<1x128xf32>
    %175 = vector.extract_strided_slice %90 {offsets = [4, 0], sizes = [1, 128], strides = [1, 1]} : vector<8x128xf32> to vector<1x128xf32>
    %176 = vector.extract_strided_slice %93 {offsets = [4, 0], sizes = [1, 128], strides = [1, 1]} : vector<8x128xf32> to vector<1x128xf32>
    %177 = arith.subf %175, %176 : vector<1x128xf32>
    %178 = math.absf %177 : vector<1x128xf32>
    %cst_55 = arith.constant 1.000000e+00 : f32
    %179 = vector.broadcast %cst_55 : f32 to vector<1x128xf32>
    %180 = arith.cmpf olt, %178, %179 : vector<1x128xf32>
    %cst_56 = arith.constant 5.000000e-01 : f32
    %181 = vector.broadcast %cst_56 : f32 to vector<1x128xf32>
    %182 = arith.mulf %181, %177 : vector<1x128xf32>
    %183 = arith.mulf %182, %177 : vector<1x128xf32>
    %cst_57 = arith.constant 5.000000e-01 : f32
    %184 = vector.broadcast %cst_57 : f32 to vector<1x128xf32>
    %185 = arith.subf %178, %184 : vector<1x128xf32>
    %186 = arith.select %180, %183, %185 : vector<1x128xi1>, vector<1x128xf32>
    %187 = arith.addf %174, %186 : vector<1x128xf32>
    %188 = arith.mulf %187, %96 : vector<1x128xf32>
    %189 = vector.shape_cast %188 : vector<1x128xf32> to vector<1x1x128xf32>
    %cst_58 = arith.constant dense<0.000000e+00> : vector<1xf32>
    %190 = vector.multi_reduction <add>, %189, %cst_58 [1, 2] : vector<1x1x128xf32> to vector<1xf32>
    %191 = vector.shape_cast %190 : vector<1xf32> to vector<1x1x1xf32>
    %192 = vector.extract %191[0, 0, 0] : f32 from vector<1x1x1xf32>
    %193 = vector.extract_strided_slice %90 {offsets = [5, 0], sizes = [1, 128], strides = [1, 1]} : vector<8x128xf32> to vector<1x128xf32>
    %194 = vector.extract_strided_slice %93 {offsets = [5, 0], sizes = [1, 128], strides = [1, 1]} : vector<8x128xf32> to vector<1x128xf32>
    %cst_59 = arith.constant 0.000000e+00 : f32
    %195 = vector.broadcast %cst_59 : f32 to vector<1x128xf32>
    %196 = arith.maximumf %193, %195 : vector<1x128xf32>
    %197 = arith.mulf %193, %194 : vector<1x128xf32>
    %198 = arith.subf %196, %197 : vector<1x128xf32>
    %199 = math.absf %193 : vector<1x128xf32>
    %cst_60 = arith.constant 0.000000e+00 : f32
    %200 = vector.broadcast %cst_60 : f32 to vector<1x128xf32>
    %201 = arith.subf %200, %199 : vector<1x128xf32>
    %202 = math.exp %201 : vector<1x128xf32>
    %cst_61 = arith.constant 1.000000e+00 : f32
    %203 = vector.broadcast %cst_61 : f32 to vector<1x128xf32>
    %204 = arith.addf %203, %202 : vector<1x128xf32>
    %205 = math.log %204 : vector<1x128xf32>
    %206 = arith.addf %198, %205 : vector<1x128xf32>
    %207 = arith.mulf %206, %96 : vector<1x128xf32>
    %208 = vector.shape_cast %207 : vector<1x128xf32> to vector<1x1x128xf32>
    %cst_62 = arith.constant dense<0.000000e+00> : vector<1xf32>
    %209 = vector.multi_reduction <add>, %208, %cst_62 [1, 2] : vector<1x1x128xf32> to vector<1xf32>
    %210 = vector.shape_cast %209 : vector<1xf32> to vector<1x1x1xf32>
    %211 = vector.extract %210[0, 0, 0] : f32 from vector<1x1x1xf32>
    %212 = vector.extract_strided_slice %90 {offsets = [6, 0], sizes = [1, 128], strides = [1, 1]} : vector<8x128xf32> to vector<1x128xf32>
    %213 = math.absf %212 : vector<1x128xf32>
    %cst_63 = arith.constant 0.000000e+00 : f32
    %214 = vector.broadcast %cst_63 : f32 to vector<1x128xf32>
    %215 = arith.subf %214, %213 : vector<1x128xf32>
    %216 = math.exp %215 : vector<1x128xf32>
    %cst_64 = arith.constant 0.000000e+00 : f32
    %217 = vector.broadcast %cst_64 : f32 to vector<1x128xf32>
    %218 = arith.cmpf oge, %212, %217 : vector<1x128xf32>
    %cst_65 = arith.constant 1.000000e+00 : f32
    %219 = vector.broadcast %cst_65 : f32 to vector<1x128xf32>
    %220 = arith.select %218, %219, %216 : vector<1x128xi1>, vector<1x128xf32>
    %cst_66 = arith.constant 1.000000e+00 : f32
    %221 = vector.broadcast %cst_66 : f32 to vector<1x128xf32>
    %222 = arith.addf %221, %216 : vector<1x128xf32>
    %223 = tpu.reciprocal %222 {approx = true} : vector<1x128xf32> -> vector<1x128xf32>
    %224 = arith.mulf %222, %223 : vector<1x128xf32>
    %cst_67 = arith.constant 2.000000e+00 : f32
    %225 = vector.broadcast %cst_67 : f32 to vector<1x128xf32>
    %226 = arith.subf %225, %224 : vector<1x128xf32>
    %227 = arith.mulf %223, %226 : vector<1x128xf32>
    %228 = arith.mulf %220, %227 : vector<1x128xf32>
    %cst_68 = arith.constant 1.800000e+02 : f32
    %229 = vector.broadcast %cst_68 : f32 to vector<1x128xf32>
    %230 = arith.mulf %229, %228 : vector<1x128xf32>
    %231 = vector.extract_strided_slice %93 {offsets = [6, 0], sizes = [1, 128], strides = [1, 1]} : vector<8x128xf32> to vector<1x128xf32>
    %232 = arith.subf %230, %231 : vector<1x128xf32>
    %233 = math.absf %232 : vector<1x128xf32>
    %cst_69 = arith.constant 1.000000e+00 : f32
    %234 = vector.broadcast %cst_69 : f32 to vector<1x128xf32>
    %235 = arith.cmpf olt, %233, %234 : vector<1x128xf32>
    %cst_70 = arith.constant 5.000000e-01 : f32
    %236 = vector.broadcast %cst_70 : f32 to vector<1x128xf32>
    %237 = arith.mulf %236, %232 : vector<1x128xf32>
    %238 = arith.mulf %237, %232 : vector<1x128xf32>
    %cst_71 = arith.constant 5.000000e-01 : f32
    %239 = vector.broadcast %cst_71 : f32 to vector<1x128xf32>
    %240 = arith.subf %233, %239 : vector<1x128xf32>
    %241 = arith.select %235, %238, %240 : vector<1x128xi1>, vector<1x128xf32>
    %242 = arith.mulf %241, %96 : vector<1x128xf32>
    %243 = vector.shape_cast %242 : vector<1x128xf32> to vector<1x1x128xf32>
    %cst_72 = arith.constant dense<0.000000e+00> : vector<1xf32>
    %244 = vector.multi_reduction <add>, %243, %cst_72 [1, 2] : vector<1x1x128xf32> to vector<1xf32>
    %245 = vector.shape_cast %244 : vector<1xf32> to vector<1x1x1xf32>
    %246 = vector.extract %245[0, 0, 0] : f32 from vector<1x1x1xf32>
    %247 = vector.extract_strided_slice %90 {offsets = [7, 0], sizes = [1, 128], strides = [1, 1]} : vector<8x128xf32> to vector<1x128xf32>
    %248 = vector.extract_strided_slice %93 {offsets = [7, 0], sizes = [1, 128], strides = [1, 1]} : vector<8x128xf32> to vector<1x128xf32>
    %cst_73 = arith.constant 0.000000e+00 : f32
    %249 = vector.broadcast %cst_73 : f32 to vector<1x128xf32>
    %250 = arith.maximumf %247, %249 : vector<1x128xf32>
    %251 = arith.mulf %247, %248 : vector<1x128xf32>
    %252 = arith.subf %250, %251 : vector<1x128xf32>
    %253 = math.absf %247 : vector<1x128xf32>
    %cst_74 = arith.constant 0.000000e+00 : f32
    %254 = vector.broadcast %cst_74 : f32 to vector<1x128xf32>
    %255 = arith.subf %254, %253 : vector<1x128xf32>
    %256 = math.exp %255 : vector<1x128xf32>
    %cst_75 = arith.constant 1.000000e+00 : f32
    %257 = vector.broadcast %cst_75 : f32 to vector<1x128xf32>
    %258 = arith.addf %257, %256 : vector<1x128xf32>
    %259 = math.log %258 : vector<1x128xf32>
    %260 = arith.addf %252, %259 : vector<1x128xf32>
    %261 = arith.mulf %260, %96 : vector<1x128xf32>
    %262 = vector.shape_cast %261 : vector<1x128xf32> to vector<1x1x128xf32>
    %cst_76 = arith.constant dense<0.000000e+00> : vector<1xf32>
    %263 = vector.multi_reduction <add>, %262, %cst_76 [1, 2] : vector<1x1x128xf32> to vector<1xf32>
    %264 = vector.shape_cast %263 : vector<1xf32> to vector<1x1x1xf32>
    %265 = vector.extract %264[0, 0, 0] : f32 from vector<1x1x1xf32>
    %cst_77 = arith.constant 0.000000e+00 : f32
    %266 = arith.cmpf oeq, %87, %cst_77 : f32
    %cst_78 = arith.constant 0.000000e+00 : f32
    %267 = arith.subf %cst_78, %83 : f32
    %268 = arith.addf %79, %83 : f32
    %cst_79 = arith.constant 0.000000e+00 : f32
    %269 = arith.subf %cst_79, %268 : f32
    %cst_80 = arith.constant 1.000000e+00 : f32
    %270 = arith.maximumf %87, %cst_80 : f32
    %271 = arith.divf %269, %270 : f32
    %272 = arith.select %266, %267, %271 : f32
    %cst_81 = arith.constant 9.99999993E-9 : f32
    %273 = arith.addf %272, %cst_81 : f32
    %cst_82 = arith.constant 9.99999993E-9 : f32
    %274 = arith.addf %162, %cst_82 : f32
    %cst_83 = arith.constant 1.000000e-01 : f32
    %275 = arith.mulf %cst_83, %274 : f32
    %cst_84 = arith.constant 9.99999993E-9 : f32
    %276 = arith.addf %192, %cst_84 : f32
    %cst_85 = arith.constant 1.000000e-01 : f32
    %277 = arith.mulf %cst_85, %276 : f32
    %cst_86 = arith.constant 1.000000e-01 : f32
    %278 = arith.mulf %cst_86, %211 : f32
    %cst_87 = arith.constant 0.00999999977 : f32
    %279 = arith.mulf %cst_87, %246 : f32
    %cst_88 = arith.constant 9.99999993E-9 : f32
    %280 = arith.addf %265, %cst_88 : f32
    %cst_89 = arith.constant 1.000000e-01 : f32
    %281 = arith.mulf %cst_89, %280 : f32
    %282 = arith.addf %273, %275 : f32
    %283 = arith.addf %282, %277 : f32
    %284 = arith.addf %283, %278 : f32
    %285 = arith.addf %284, %279 : f32
    %286 = arith.addf %285, %281 : f32
    %c0_i32_90 = arith.constant 0 : i32
    %287 = vector.broadcast %c0_i32_90 : i32 to vector<1x128xi32>
    %288 = arith.cmpi eq, %1, %287 : vector<1x128xi32>
    %289 = arith.mulf %286, %7 : f32
    %cst_91 = arith.constant 0.000000e+00 : f32
    %290 = vector.broadcast %289 : f32 to vector<1x128xf32>
    %291 = vector.broadcast %cst_91 : f32 to vector<1x128xf32>
    %292 = arith.select %288, %290, %291 : vector<1x128xi1>, vector<1x128xf32>
    %293 = arith.addf %2, %292 : vector<1x128xf32>
    %c1_i32_92 = arith.constant 1 : i32
    %294 = vector.broadcast %c1_i32_92 : i32 to vector<1x128xi32>
    %295 = arith.cmpi eq, %1, %294 : vector<1x128xi32>
    %296 = arith.mulf %273, %7 : f32
    %cst_93 = arith.constant 0.000000e+00 : f32
    %297 = vector.broadcast %296 : f32 to vector<1x128xf32>
    %298 = vector.broadcast %cst_93 : f32 to vector<1x128xf32>
    %299 = arith.select %295, %297, %298 : vector<1x128xi1>, vector<1x128xf32>
    %300 = arith.addf %293, %299 : vector<1x128xf32>
    %c2_i32 = arith.constant 2 : i32
    %301 = vector.broadcast %c2_i32 : i32 to vector<1x128xi32>
    %302 = arith.cmpi eq, %1, %301 : vector<1x128xi32>
    %303 = arith.mulf %275, %7 : f32
    %cst_94 = arith.constant 0.000000e+00 : f32
    %304 = vector.broadcast %303 : f32 to vector<1x128xf32>
    %305 = vector.broadcast %cst_94 : f32 to vector<1x128xf32>
    %306 = arith.select %302, %304, %305 : vector<1x128xi1>, vector<1x128xf32>
    %307 = arith.addf %300, %306 : vector<1x128xf32>
    %c3_i32 = arith.constant 3 : i32
    %308 = vector.broadcast %c3_i32 : i32 to vector<1x128xi32>
    %309 = arith.cmpi eq, %1, %308 : vector<1x128xi32>
    %310 = arith.mulf %277, %7 : f32
    %cst_95 = arith.constant 0.000000e+00 : f32
    %311 = vector.broadcast %310 : f32 to vector<1x128xf32>
    %312 = vector.broadcast %cst_95 : f32 to vector<1x128xf32>
    %313 = arith.select %309, %311, %312 : vector<1x128xi1>, vector<1x128xf32>
    %314 = arith.addf %307, %313 : vector<1x128xf32>
    %c4_i32 = arith.constant 4 : i32
    %315 = vector.broadcast %c4_i32 : i32 to vector<1x128xi32>
    %316 = arith.cmpi eq, %1, %315 : vector<1x128xi32>
    %317 = arith.mulf %278, %7 : f32
    %cst_96 = arith.constant 0.000000e+00 : f32
    %318 = vector.broadcast %317 : f32 to vector<1x128xf32>
    %319 = vector.broadcast %cst_96 : f32 to vector<1x128xf32>
    %320 = arith.select %316, %318, %319 : vector<1x128xi1>, vector<1x128xf32>
    %321 = arith.addf %314, %320 : vector<1x128xf32>
    %c5_i32 = arith.constant 5 : i32
    %322 = vector.broadcast %c5_i32 : i32 to vector<1x128xi32>
    %323 = arith.cmpi eq, %1, %322 : vector<1x128xi32>
    %324 = arith.mulf %279, %7 : f32
    %cst_97 = arith.constant 0.000000e+00 : f32
    %325 = vector.broadcast %324 : f32 to vector<1x128xf32>
    %326 = vector.broadcast %cst_97 : f32 to vector<1x128xf32>
    %327 = arith.select %323, %325, %326 : vector<1x128xi1>, vector<1x128xf32>
    %328 = arith.addf %321, %327 : vector<1x128xf32>
    %c6_i32 = arith.constant 6 : i32
    %329 = vector.broadcast %c6_i32 : i32 to vector<1x128xi32>
    %330 = arith.cmpi eq, %1, %329 : vector<1x128xi32>
    %331 = arith.mulf %281, %7 : f32
    %cst_98 = arith.constant 0.000000e+00 : f32
    %332 = vector.broadcast %331 : f32 to vector<1x128xf32>
    %333 = vector.broadcast %cst_98 : f32 to vector<1x128xf32>
    %334 = arith.select %330, %332, %333 : vector<1x128xi1>, vector<1x128xf32>
    %335 = arith.addf %328, %334 : vector<1x128xf32>
    %c1_i32_99 = arith.constant 1 : i32
    %c0_100 = arith.constant 0 : index
    %c0_101 = arith.constant 0 : index
    %c0_102 = arith.constant 0 : index
    %336 = vector.load %arg7[%c0_100, %c0_101, %c0_102] : memref<1x1x128xf32, #tpu.memory_space<vmem>>, vector<1x1x128xf32>
    %337 = vector.shape_cast %336 : vector<1x1x128xf32> to vector<1x128xf32>
    %338 = vector.shape_cast %335 : vector<1x128xf32> to vector<1x1x128xf32>
    tpu.vector_store %arg7[%c0_100, %c0_101, %c0_102], %338 {strides = array<i32>} : memref<1x1x128xf32, #tpu.memory_space<vmem>>, vector<1x1x128xf32>,
    return
  }
  func.func @transform_0(%arg0: i32, %arg1: memref<1xi32, #tpu.memory_space<smem>>) -> (i32, i32, i32) {
    %c0_i32 = arith.constant 0 : i32
    %c0_i32_0 = arith.constant 0 : i32
    %c0_i32_1 = arith.constant 0 : i32
    return %arg0, %c0_i32, %c0_i32_0 : i32, i32, i32
  }
  func.func @transform_1(%arg0: i32, %arg1: memref<1xi32, #tpu.memory_space<smem>>) -> (i32, i32, i32) {
    %c0_i32 = arith.constant 0 : i32
    %c0_i32_0 = arith.constant 0 : i32
    %c0_i32_1 = arith.constant 0 : i32
    return %arg0, %c0_i32, %c0_i32_0 : i32, i32, i32
  }
  func.func @transform_2(%arg0: i32, %arg1: memref<1xi32, #tpu.memory_space<smem>>) -> (i32, i32, i32) {
    %c0_i32 = arith.constant 0 : i32
    %c0_i32_0 = arith.constant 0 : i32
    %c0_i32_1 = arith.constant 0 : i32
    return %arg0, %c0_i32, %c0_i32_0 : i32, i32, i32
  }
  func.func @transform_3(%arg0: i32, %arg1: memref<1xi32, #tpu.memory_space<smem>>) -> (i32, i32, i32) {
    %c0_i32 = arith.constant 0 : i32
    %c0_i32_0 = arith.constant 0 : i32
    %c0_i32_1 = arith.constant 0 : i32
    return %arg0, %c0_i32, %c0_i32_0 : i32, i32, i32
  }
  func.func @transform_4(%arg0: i32, %arg1: memref<1xi32, #tpu.memory_space<smem>>) -> (i32, i32, i32) {
    %c0_i32 = arith.constant 0 : i32
    %c0_i32_0 = arith.constant 0 : i32
    %c0_i32_1 = arith.constant 0 : i32
    return %arg0, %c0_i32, %c0_i32_0 : i32, i32, i32
  }
  func.func @transform_5(%arg0: i32, %arg1: memref<1xi32, #tpu.memory_space<smem>>) -> (i32, i32, i32) {
    %c0_i32 = arith.constant 0 : i32
    %c0_i32_0 = arith.constant 0 : i32
    %c0_i32_1 = arith.constant 0 : i32
    return %arg0, %c0_i32, %c0_i32_0 : i32, i32, i32
  }
}

</mosaic_0001>

<bundles_post_ra>
// kernel: tpu_custom_call.1
= control target key start
LH: loop header
LB: loop body
LE: loop exit
PB: predicated region body
PF: predicated region fallthrough
CT: control target
= control target key end

     0   :  { %s1421_s0 = inlined_call_operand.<no memory space> [shape: s32[1], index: 0, kind: input, shape index: {}]   ;;  %s1422_s1 = inlined_call_operand.hbm [shape: f32[2,8,128], index: 1, kind: input, shape index: {}]   ;;  %s1423_s2 = inlined_call_operand.hbm [shape: f32[2,8,128], index: 2, kind: input, shape index: {}]   ;;  %s1424_s3 = inlined_call_operand.hbm [shape: f32[2,8,128], index: 3, kind: input, shape index: {}]   ;;  %s1425_s4 = inlined_call_operand.hbm [shape: f32[2,8,128], index: 4, kind: input, shape index: {}]   ;;  %s1426_s5 = inlined_call_operand.vmem [shape: f32[2,1,128], index: 5, kind: input, shape index: {}]   ;;  %s1427_s6 = inlined_call_operand.hbm [shape: f32[2,1,128], index: 6, kind: output, shape index: {}]  }
   0x1   :  { %1434 = sst [smem:[#allocation21_spill]] %s1422_s1 }
   0x2   :  { %1435 = sst [smem:[#allocation22_spill]] %s1423_s2 }
   0x3   :  { %1436 = sst [smem:[#allocation23_spill]] %s1424_s3 }
   0x4   :  { %1437 = sst [smem:[#allocation24_spill]] %s1425_s4 }
   0x5   :  { %11 = sst [smem:[#allocation3]] %s1421_s0 }
   0x6   :  { %12 = vsyncpa [#allocation5], 0 }
   0x7   :  { %14 = vsyncpa [#allocation5 + $0x1], 0 }
   0x8   :  { %15 = vsyncpa [#allocation8], 0 }
   0x9   :  { %17 = vsyncpa [#allocation8 + $0x1], 0 }
   0xa   :  { %18 = vsyncpa [#allocation11], 0 }
   0xb   :  { %20 = vsyncpa [#allocation11 + $0x1], 0 }
   0xc   :  { %21 = vsyncpa [#allocation6], 0 }
   0xd   :  { %23 = vsyncpa [#allocation6 + $0x1], 0  ;;  %s1130_s23 = smov 0   ;;  %s1132_s24 = smov 0  }
   0xe   :  { %s1134_s25 = smov 0   ;;  %s1136_s26 = smov 0  }
   0xf LB: > { %1438 = sst [smem:[#allocation17_spill]] %s1079_s25  ;;  %s1151_s0 = sadd.s32 4294967295, %s1083_s26   ;;  %s1083_s26 = sphi %s1136_s26, %s1459_s26   ;;  %s1079_s25 = sphi %s1134_s25, %s1461_s25   ;;  %s1075_s24 = sphi %s1132_s24, %s1463_s24   ;;  %s1071_s23 = sphi %s1130_s23, %s1462_s23  }
  0x10   : > { %1439 = sst [smem:[#allocation18_spill]] %s1083_s26  ;;  %s779_s27 = sadd.s32 4294967294, %s1083_s26  }
  0x11   : > { %s1155_s28 = sadd.s32 1, %s1083_s26   ;;  %s36_s29 = sadd.s32 1, %s1079_s25 }
  0x12   : > { %1440 = sst [smem:[#allocation19_spill]] %s1155_s28  ;;  %s33_s30 = ssub.s32 %s1083_s26, %s1155_s28 }
  0x13   : > { %p43_p0 = scmp.ne.s32.totalorder %s1079_s25, %s1075_s24  ;;  %p34_p1 = scmp.eq.s32.totalorder %s33_s30, 0 }
  0x14   : > { %p44_p2 = scmp.eq.s32.totalorder %s1083_s26, 0  ;;  %p49_p3 = scmp.ne.s32.totalorder %s1075_s24, %s1071_s23 }
  0x15   : > { %p50_p4 = scmp.eq.s32.totalorder %s1151_s0, 0  ;;  %p177_p7 = scmp.eq.s32.totalorder %s1151_s0, 1 }
  0x16   : > { %s1167_s7 = scalar_select %p34_p1, %s1079_s25, %s36_s29  }
  0x17   : > { %p45_p5 = por %p44_p2, %p43_p0  ;;  %p1169_p6 = por %p50_p4, %p49_p3 }
  0x18   : > { %1441 = sst [smem:[#allocation20_spill]] %s1167_s7  ;;  %p183_p8 = scmp.eq.s32.totalorder %s779_s27, 1 }
  0x19   : > { %s1442_s8 = scalar_select %p1169_p6, 1, 0 }
  0x1a   : > { %p849_p10 = scmp.lt.s32.totalorder %s1083_s26, 2  ;;  %p1176_p11 = por %p177_p7, %p43_p0 }
  0x1b   : > { %p1180_p12 = por %p183_p8, %p49_p3  ;;  %s1185_s11 = sand.u32 1, %s1079_s25  }
  0x1c   : > { %s1443_s9 = scalar_select %p1176_p11, 1, 0 }
  0x1d   : > { %s1444_s10 = scalar_select %p1180_p12, 1, 0 }
  0x1e   : > { %s1188_s12 = sshll.u32 %s1083_s26, 7  ;;  %s1191_s13 = sshll.u32 %s1185_s11, 3 }
  0x1f   : > { %p1193_p13 = pnand %p849_p10, %p45_p5  ;;  %s221_s15 = sand.u32 1, %s1083_s26  }
  0x20   : > { %s1446_s2 = sld [smem:[#allocation22_spill]]  ;;  %s225_s19 = scalar_lea.vmem [#allocation7], %s1191_s13 }
  0x21   : > { %s232_s20 = sshll.u32 %s225_s19, 4  ;;  %s1206_s21 = scalar_lea.sflag [#allocation8], %s221_s15  ;;  %s233_s20 = int_to_ptr.vmem [resolvable:$true] %s232_s20 }
  0x22   : > { %p1212_p2 = pneg %p1193_p13 }
  0x26   : > { %s1202_s18 = scalar_lea.hbm %s1446_s2, %s1188_s12  ;;  %s904_s16 = scalar_lea.hbm %s1446_s2, 256 }
  0x27   : > { %s899_s22 = scalar_lea.hbm %s1202_s18, 128  ;;  %p905_p5 = scmp.lt.s32.totalorder %s1202_s18, %s1446_s2 }
  0x28   : > { %p900_p1 = scmp.ne.s32.totalorder %s1202_s18, %s899_s22  ;;  %p906_p7 = scmp.lt.s32.totalorder %s904_s16, %s899_s22 }
  0x2a   : > { %p902_p3 = pnand %p1212_p2, %p900_p1  ;;  %p907_p8 = por %p906_p7, %p905_p5 }
  0x2c   : > { %p903_p4 = pneg %p902_p3 }
  0x2e   : > { %p908_p10 = pnand %p907_p8, %p903_p4 }
  0x30   : > { %911 = shalt.err (!%p908_p10)
}
  0x31   : > { %s912_s15 = scalar_lea.vmem %s233_s20, 128  ;;  %s1085_s7 = smov [#allocation7]  }
  0x32   : > { %p913_p9 = scmp.ne.s32.totalorder %s233_s20, %s912_s15  ;;  %s917_s25 = sshll.u32 %s1085_s7, 4  ;;  %s918_s25 = int_to_ptr.vmem [resolvable:$false] %s917_s25 }
  0x33   : > { %s919_s28 = scalar_lea.vmem %s918_s25, 256  ;;  %p920_p1 = scmp.lt.s32.totalorder %s233_s20, %s918_s25 }
  0x34   : > { %p915_p0 = pnand %p913_p9, %p1212_p2  ;;  %p921_p3 = scmp.lt.s32.totalorder %s919_s28, %s912_s15 }
  0x36   : > { %p916_p12 = pneg %p915_p0  ;;  %p922_p11 = por %p921_p3, %p920_p1 }
  0x38   : > { %p923_p6 = pnand %p922_p11, %p916_p12 }
  0x3a   : > { %926 = shalt.err (!%p923_p6)
}
  0x3b   : > { %838 = dma.hbm_to_vmem [thread:$0]  (!%p1193_p13), %s1202_s18, 128, %s233_s20, %s1206_s21  }
  0x3c   : > { %p279_p9 = scmp.lt.s32.totalorder %s1083_s26, 3  ;;  %s1448_s1 = sld [smem:[#allocation21_spill]] }
  0x3d   : > { %p1449_p0 = scmp.ge.s32.totalorder %s1083_s26, 1  ;;  %s207_s29 = scalar_lea.vmem [#allocation4], %s1191_s13 }
  0x3e   : > { %s214_s30 = sshll.u32 %s207_s29, 4  ;;  %s204_s16 = scalar_lea.sflag [#allocation5], %s1185_s11  ;;  %s215_s30 = int_to_ptr.vmem [resolvable:$true] %s214_s30 }
  0x3f   : > { %p1240_p6 = pnand %p1449_p0, %p279_p9 }
  0x41   : > { %s1450_s28 = scalar_select %p1240_p6, 1, 0 }
  0x42   : > { %s1236_s25 = scalar_lea.hbm %s1448_s1, %s1188_s12  ;;  %s932_s19 = scalar_lea.hbm %s1448_s1, 256 }
  0x43   : > { %s927_s17 = scalar_lea.hbm %s1236_s25, 128  ;;  %p933_p5 = scmp.lt.s32.totalorder %s1236_s25, %s1448_s1 }
  0x44   : > { %p928_p11 = scmp.ne.s32.totalorder %s1236_s25, %s927_s17  ;;  %p934_p7 = scmp.lt.s32.totalorder %s932_s19, %s927_s17 }
  0x46   : > { %p930_p12 = pnand %p928_p11, %p1212_p2  ;;  %p935_p8 = por %p934_p7, %p933_p5 }
  0x48   : > { %p931_p4 = pneg %p930_p12 }
  0x4a   : > { %p936_p10 = pnand %p935_p8, %p931_p4 }
  0x4c   : > { %939 = shalt.err (!%p936_p10)
}
  0x4d   : > { %s940_s22 = scalar_lea.vmem %s215_s30, 128  ;;  %s1086_s29 = smov [#allocation4]  }
  0x4e   : > { %p941_p1 = scmp.ne.s32.totalorder %s215_s30, %s940_s22  ;;  %s945_s2 = sshll.u32 %s1086_s29, 4  ;;  %s946_s2 = int_to_ptr.vmem [resolvable:$false] %s945_s2 }
  0x4f   : > { %s947_s26 = scalar_lea.vmem %s946_s2, 256  ;;  %p948_p0 = scmp.lt.s32.totalorder %s215_s30, %s946_s2 }
  0x50   : > { %p943_p3 = pnand %p941_p1, %p1212_p2  ;;  %p949_p11 = scmp.lt.s32.totalorder %s947_s26, %s940_s22 }
  0x52   : > { %p944_p9 = pneg %p943_p3  ;;  %p950_p12 = por %p949_p11, %p948_p0 }
  0x54   : > { %p951_p6 = pnand %p950_p12, %p944_p9 }
  0x56   : > { %954 = shalt.err (!%p951_p6)
}
  0x57   : > { %835 = dma.hbm_to_vmem [thread:$0]  (!%p1193_p13), %s1236_s25, 128, %s215_s30, %s204_s16  }
  0x58   : > { %s1451_s3 = sld [smem:[#allocation23_spill]]  ;;  %s243_s19 = scalar_lea.vmem [#allocation9], %s1191_s13 }
  0x59   : > { %s250_s15 = sshll.u32 %s243_s19, 4  ;;  %s251_s15 = int_to_ptr.vmem [resolvable:$true] %s250_s15 }
  0x5e   : > { %s248_s20 = scalar_lea.hbm %s1451_s3, %s1188_s12  ;;  %s960_s22 = scalar_lea.hbm %s1451_s3, 256 }
  0x5f   : > { %s955_s7 = scalar_lea.hbm %s248_s20, 128  ;;  %p961_p6 = scmp.lt.s32.totalorder %s248_s20, %s1451_s3 }
  0x60   : > { %p956_p4 = scmp.ne.s32.totalorder %s248_s20, %s955_s7  ;;  %p962_p8 = scmp.lt.s32.totalorder %s960_s22, %s955_s7 }
  0x62   : > { %p958_p5 = pnand %p956_p4, %p1212_p2  ;;  %p963_p10 = por %p962_p8, %p961_p6 }
  0x64   : > { %p959_p7 = pneg %p958_p5 }
  0x66   : > { %p964_p1 = pnand %p963_p10, %p959_p7 }
  0x68   : > { %967 = shalt.err (!%p964_p1)
}
  0x69   : > { %s968_s25 = scalar_lea.vmem %s251_s15, 128  ;;  %s1087_s30 = smov [#allocation9]  }
  0x6a   : > { %p969_p3 = scmp.ne.s32.totalorder %s251_s15, %s968_s25  ;;  %s973_s16 = sshll.u32 %s1087_s30, 4  ;;  %s974_s16 = int_to_ptr.vmem [resolvable:$false] %s973_s16 }
  0x6b   : > { %s975_s17 = scalar_lea.vmem %s974_s16, 256  ;;  %p976_p11 = scmp.lt.s32.totalorder %s251_s15, %s974_s16 }
  0x6c   : > { %p971_p9 = pnand %p969_p3, %p1212_p2  ;;  %p977_p12 = scmp.lt.s32.totalorder %s975_s17, %s968_s25 }
  0x6e   : > { %p972_p0 = pneg %p971_p9  ;;  %p978_p4 = por %p977_p12, %p976_p11 }
  0x70   : > { %p979_p5 = pnand %p978_p4, %p972_p0 }
  0x72   : > { %982 = shalt.err (!%p979_p5)
}
  0x73   : > { %841 = dma.hbm_to_vmem [thread:$0]  (!%p1193_p13), %s248_s20, 128, %s251_s15, %s1206_s21  }
  0x74   : > { %s1452_s4 = sld [smem:[#allocation24_spill]]  ;;  %s261_s7 = scalar_lea.vmem [#allocation10], %s1191_s13 }
  0x75   : > { %s268_s2 = sshll.u32 %s261_s7, 4  ;;  %s258_s26 = scalar_lea.sflag [#allocation11], %s1185_s11  ;;  %s269_s2 = int_to_ptr.vmem [resolvable:$true] %s268_s2 }
  0x7a   : > { %s1284_s19 = scalar_lea.hbm %s1452_s4, %s1188_s12  ;;  %s988_s21 = scalar_lea.hbm %s1452_s4, 256 }
  0x7b   : > { %s983_s22 = scalar_lea.hbm %s1284_s19, 128  ;;  %p989_p10 = scmp.lt.s32.totalorder %s1284_s19, %s1452_s4 }
  0x7c   : > { %p984_p7 = scmp.ne.s32.totalorder %s1284_s19, %s983_s22  ;;  %p990_p1 = scmp.lt.s32.totalorder %s988_s21, %s983_s22 }
  0x7e   : > { %p986_p6 = pnand %p984_p7, %p1212_p2  ;;  %p991_p3 = por %p990_p1, %p989_p10 }
  0x80   : > { %p987_p8 = pneg %p986_p6 }
  0x82   : > { %p992_p9 = pnand %p991_p3, %p987_p8 }
  0x84   : > { %995 = shalt.err (!%p992_p9)
}
  0x85   : > { %s996_s12 = scalar_lea.vmem %s269_s2, 128  ;;  %s1088_s11 = smov [#allocation10]  }
  0x86   : > { %p997_p0 = scmp.ne.s32.totalorder %s269_s2, %s996_s12  ;;  %s1001_s13 = sshll.u32 %s1088_s11, 4  ;;  %s1002_s13 = int_to_ptr.vmem [resolvable:$false] %s1001_s13 }
  0x87   : > { %s1003_s30 = scalar_lea.vmem %s1002_s13, 256  ;;  %p1004_p4 = scmp.lt.s32.totalorder %s269_s2, %s1002_s13 }
  0x88   : > { %p999_p11 = pnand %p997_p0, %p1212_p2  ;;  %p1005_p5 = scmp.lt.s32.totalorder %s1003_s30, %s996_s12 }
  0x8a   : > { %p1000_p12 = pneg %p999_p11  ;;  %p1006_p7 = por %p1005_p5, %p1004_p4 }
  0x8c   : > { %p1007_p6 = pnand %p1006_p7, %p1000_p12 }
  0x8e   : > { %1010 = shalt.err (!%p1007_p6)
}
  0x8f   : > { %844 = dma.hbm_to_vmem [thread:$0]  (!%p1193_p13), %s1284_s19, 128, %s269_s2, %s258_s26  }
  0x90   : > { %p1453_p8 = scmp.ne.s32.totalorder %s1450_s28, 0 }
  0x91   : > { %s1307_s27 = sand.u32 (!%p1453_p8), 1, %s1075_s24   ;;  %p1454_p2 = scmp.ne.s32.totalorder (!%p1453_p8), %s1442_s8, 0 }
  0x92   : > { %283 = sbr.rel (%p1453_p8) target bundleno = 526 (0x20e), region = 40  ;;  %s1310_s16 = sshll.u32 (!%p1453_p8), %s1307_s27, 3 }
  0x93   : > { %s286_s17 = scalar_lea.sflag (!%p1453_p8), [#allocation5], %s1307_s27  ;;  %s289_s1 = scalar_lea.vmem (!%p1453_p8), [#allocation4], %s1310_s16 }
  0x97   : > { %1054 = dma.done.wait (%p1454_p2), %s286_s17, 128  }
  0x98   : > { %1056 = vsyncadd (%p1454_p2), %s286_s17, 4294967168  ;;  %s294_s14 = sand.u32 1, %s1151_s0   ;;  %s298_s18 = scalar_lea.vmem [#allocation7], %s1310_s16 }
  0x99   : > { %s295_s28 = scalar_lea.sflag [#allocation8], %s294_s14 }
  0x9a   : > { %1058 = dma.done.wait (%p1454_p2), %s295_s28, 256  }
  0x9b   : > { %1060 = vsyncadd (%p1454_p2), %s295_s28, 4294967040  ;;  %s307_s19 = scalar_lea.vmem [#allocation9], %s1310_s16  ;;  %s313_s7 = scalar_lea.sflag [#allocation11], %s1307_s27 }
  0x9c   : > { %s316_s2 = scalar_lea.vmem [#allocation10], %s1310_s16 }
  0x9d   : > { %1062 = dma.done.wait (%p1454_p2), %s313_s7, 128  }
  0x9e   : > { %1064 = vsyncadd (%p1454_p2), %s313_s7, 4294967168  ;;  %v1331_v0 = vld [vmem:[%s298_s18] sm:$0xff]  ;;  %v1333_v1 = vld [vmem:[%s289_s1] sm:$0xff]  ;;  %v1089_v4 = vmov 0.0   ;;  %p360_p13 = scmp.lt.s32.totalorder %s1151_s0, 1  ;;  %vm475_vm4 = vcmask 1040384  }
  0x9f   : > { %v438_v2 = vld [vmem:[%s307_s19] sm:$0xff]  ;;  %vm391_vm0 = vcmp.eq.f32.partialorder %v1331_v0, 1.0  ;;  %v371_v3 = vand.u32 2147483647, %v1333_v1  ;;  %v439_v15 = vld [vmem:[%s316_s2] sm:$0xff]  ;;  %vm382_vm1 = vcmp.ge.f32.partialorder %v1333_v1, 0.0 }
  0xa0   : > { %v1338_v5 = vsel %vm391_vm0, 1.0, %v1089_v4  ;;  %v441_v7 = vand.u32 2147483647, %v438_v2  ;;  %v486_v16 = vsub.f32 %v438_v2, %v439_v15  ;;  %s361_s8 = scalar_select %p360_p13, %s1151_s0, 1  ;;  %v511_v19 = vmax.f32 %v438_v2, 0.0 }
  0xa1   : > { %429 = vadd.xlane.f32.xlu1 %v1338_v5  ;;  %v372_v6 = vsub.f32 0.0, %v371_v3  ;;  %v512_v20 = vmul.f32 %v439_v15, %v438_v2  ;;  %v388_v24 = vsub.f32 0.0, %v1333_v1  ;;  %v397_v26 = vsub.f32 1.0, %v1331_v0  ;;  %s1090_s15 = smov 1.0   ;;  %s363_s13 = sld [smem:[#allocation3]] }
  0xa2   : > { %v442_v9 = vsub.f32 0.0, %v441_v7  ;;  %v487_v17 = vand.u32 2147483647, %v486_v16  ;;  %v489_v18 = vmul.f32 0.5, %v486_v16  ;;  %s362_s29 = scalar_lea.vmem %s1426_s5, %s361_s8  ;;  %vm445_vm3 = vcmp.ge.f32.partialorder %v438_v2, 0.0  ;;  %p1455_p9 = scmp.ne.s32.totalorder %s1443_s9, 0 }
  0xa3   : > { %v373_v8 = vmul.f32 1.442695, %v372_v6  ;;  %v513_v30 = vsub.f32 %v511_v19, %v512_v20  ;;  %v398_v41 = vmul.f32 %v397_v26, %v397_v26  ;;  %v798_v42 = vld [vmem:[%s362_s29] ss:$0 sm:$0xff]  ;;  %vm394_vm5 = vcmp.lt.f32.partialorder %v1331_v0, 1.0 }
  0xa4   : > { %v443_v10 = vmul.f32 1.442695, %v442_v9  ;;  %v490_v21 = vmul.f32 %v489_v18, %v486_v16  ;;  %v799_v22 = vadd.f32 -0.5, %v487_v17  ;;  %vm488_vm2 = vcmp.lt.f32.partialorder %v487_v17, 1.0 }
  0xa5   : > { %885 = vpow2.f32 %v373_v8  ;;  %v399_v53 = vmul.f32 %v398_v41, %v398_v41  ;;  %v796_v6 = vsel %vm394_vm5, 1.0, %v1089_v4 }
  0xa6   : > { %887 = vpow2.f32 %v443_v10  ;;  %v492_v35 = vsel %vm488_vm2, %v490_v21, %v799_v22 }
  0xa7   : > { %v494_v47 = vrot.slane %v492_v35, 1  ;;  %p366_p1 = scmp.lt.s32.totalorder %s1151_s0, %s363_s13 }
  0xa9   : > { %v496_v57 = vadd.f32 %v494_v47, %v492_v35  ;;  %s367_s29 = scalar_select %p366_p1, 1, 0 }
  0xab   : > { %v497_v7 = vmul.f32 %v798_v42, %v496_v57 }
  0xad   : > { %v499_v16 = vrot.slane %v497_v7, 3 }
  0xb2   : > { %v886_v11 = vpop.eup %885 }
  0xb3   : > { %v375_v12 = vadd.f32 1.0, %v886_v11  ;;  %v888_v13 = vpop.eup %887  ;;  %v383_v33 = vsel %vm382_vm1, 1.0, %v886_v11 }
  0xb4   : > { %v447_v14 = vadd.f32 1.0, %v888_v13  ;;  %v446_v46 = vsel %vm445_vm3, 1.0, %v888_v13 }
  0xb5   : > { %889 = vrcp.f32 %v375_v12 }
  0xb6   : > { %891 = vlog2.f32 %v375_v12 }
  0xb7   : > { %893 = vrcp.f32 %v447_v14 }
  0xb8   : > { %895 = vlog2.f32 %v447_v14 }
  0xc2   : > { %v890_v23 = vpop.eup %889 }
  0xc3   : > { %v892_v25 = vpop.eup %891  ;;  %v377_v27 = vmul.f32 %v890_v23, %v375_v12 }
  0xc4   : > { %v894_v28 = vpop.eup %893  ;;  %v381_v29 = vmul.f32 0.6931472, %v892_v25 }
  0xc5   : > { %v896_v31 = vpop.eup %895  ;;  %v378_v32 = vsub.f32 2.0, %v377_v27  ;;  %v449_v34 = vmul.f32 %v894_v28, %v447_v14 }
  0xc6   : > { %v385_v36 = vsub.f32 0.0, %v381_v29  ;;  %v386_v37 = vsub.f32 %v1333_v1, %v381_v29  ;;  %v389_v38 = vsub.f32 %v388_v24, %v381_v29  ;;  %v515_v39 = vmul.f32 0.6931472, %v896_v31 }
  0xc7   : > { %v379_v40 = vmul.f32 %v890_v23, %v378_v32  ;;  %v450_v43 = vsub.f32 2.0, %v449_v34 }
  0xc8   : > { %v390_v44 = vsel %vm382_vm1, %v389_v38, %v385_v36  ;;  %v516_v45 = vadd.f32 %v515_v39, %v513_v30  ;;  %v387_v50 = vsel %vm382_vm1, %v385_v36, %v386_v37 }
  0xc9   : > { %v384_v48 = vmul.f32 %v383_v33, %v379_v40  ;;  %v451_v49 = vmul.f32 %v894_v28, %v450_v43 }
  0xca   : > { %v517_v51 = vmul.f32 %v798_v42, %v516_v45 }
  0xcb   : > { %v400_v52 = vsub.f32 1.0, %v384_v48  ;;  %v405_v54 = vmul.f32 %v390_v44, %v384_v48  ;;  %v452_v55 = vmul.f32 %v451_v49, %v446_v46 }
  0xcc   : > { %v519_v56 = vrot.slane %v517_v51, 5  ;;  %v553_v25 = vrot.slane %v517_v51, 7 }
  0xcd   : > { %v401_v58 = vmul.f32 %v400_v52, %v387_v50  ;;  %v406_v59 = vmul.f32 %v405_v54, %v384_v48  ;;  %v453_v60 = vmul.f32 10.0, %v452_v55  ;;  %v531_v61 = vmul.f32 180.0, %v452_v55 }
  0xce   : > { %v521_v62 = vsel %vm475_vm4, %v519_v56, 0.0  ;;  %v555_v28 = vsel %vm475_vm4, %v553_v25, 0.0 }
  0xcf   : > { %v402_v63 = vmul.f32 %v401_v58, %v400_v52  ;;  %v407_v2 = vmul.f32 %v406_v59, %v399_v53  ;;  %522 = vadd.xlane.f32.xlu1 %v521_v62  ;;  %v454_v1 = vsub.f32 %v453_v60, %v439_v15  ;;  %v532_v3 = vsub.f32 %v531_v61, %v439_v15 }
  0xd1   : > { %v403_v8 = vmul.f32 %v1338_v5, %v402_v63  ;;  %v455_v9 = vand.u32 2147483647, %v454_v1  ;;  %v457_v0 = vmul.f32 0.5, %v454_v1  ;;  %v533_v10 = vand.u32 2147483647, %v532_v3 }
  0xd2   : > { %v535_v11 = vmul.f32 0.5, %v532_v3  ;;  %v408_v12 = vmul.f32 %v796_v6, %v407_v2  ;;  %v501_v5 = vsel %vm475_vm4, %v499_v16, 0.0 }
  0xd3   : > { %411 = vadd.xlane.f32.xlu0 %v403_v8  ;;  %vm456_vm6 = vcmp.lt.f32.partialorder %v455_v9, 1.0  ;;  %v458_v13 = vmul.f32 %v457_v0, %v454_v1  ;;  %v797_v14 = vadd.f32 -0.5, %v455_v9  ;;  %vm534_vm7 = vcmp.lt.f32.partialorder %v533_v10, 1.0 }
  0xd4   : > { %v536_v17 = vmul.f32 %v535_v11, %v532_v3  ;;  %v800_v18 = vadd.f32 -0.5, %v533_v10 }
  0xd5   : > { %v460_v19 = vsel %vm456_vm6, %v458_v13, %v797_v14 }
  0xd6   : > { %v462_v15 = vrot.slane %v460_v19, 1  ;;  %v538_v20 = vsel %vm534_vm7, %v536_v17, %v800_v18 }
  0xd7   : > { %420 = vadd.xlane.f32.xlu0 %v408_v12  ;;  %v539_v4 = vmul.f32 %v798_v42, %v538_v20 }
  0xd8   : > { %v464_v21 = vadd.f32 %v462_v15, %v460_v19 }
  0xd9   : > { %v541_v22 = vrot.slane %v539_v4, 6 }
  0xda   : > { %v471_v23 = vmul.f32 %v798_v42, %v464_v21 }
  0xdb   : > { %502 = vadd.xlane.f32.xlu0 %v501_v5  ;;  %v543_v26 = vsel %vm475_vm4, %v541_v22, 0.0 }
  0xdc   : > { %v473_v24 = vrot.slane %v471_v23, 1  ;;  %v364_v23 = vlaneseq }
  0xde   : > { %v476_v27 = vsel %vm475_vm4, %v473_v24, 0.0  ;;  %v365_v24 = vand.u32 127, %v364_v23 }
  0xdf   : > { %477 = vadd.xlane.f32.xlu1 %v476_v27  ;;  %544 = vadd.xlane.f32.xlu0 %v543_v26 }
  0xe0   : > { %vm589_vm8 = vcmp.eq.s32.totalorder %v365_v24, 0  ;;  %vm594_vm9 = vcmp.eq.s32.totalorder %v365_v24, 1  ;;  %vm599_vm10 = vcmp.eq.s32.totalorder %v365_v24, 2  ;;  %vm604_vm11 = vcmp.eq.s32.totalorder %v365_v24, 3 }
  0xe1   : > { %vm609_vm12 = vcmp.eq.s32.totalorder %v365_v24, 4  ;;  %vm614_vm13 = vcmp.eq.s32.totalorder %v365_v24, 5  ;;  %vm619_vm14 = vcmp.eq.s32.totalorder %v365_v24, 6 }
  0xe3   : > { %556 = vadd.xlane.f32.xlu1 %v555_v28 }
 0x12a   : > { %v430_v29 = vpop.xlane.xlu1 %429 }
 0x12b   : > { %v431_v30 = vrot.slane %v430_v29, 4 }
 0x12d   : > { %v432_v31 = vadd.f32 %v431_v30, %v430_v29 }
 0x12f   : > { %v433_v37 = vrot.slane %v432_v31, 2 }
 0x131   : > { %v434_v44 = vadd.f32 %v433_v37, %v432_v31 }
 0x133   : > { %v435_v53 = vrot.slane %v434_v44, 1 }
 0x135   : > { %v436_v1 = vadd.f32 %v435_v53, %v434_v44 }
 0x158   : > { %v523_v34 = vpop.xlane.xlu1 %522 }
 0x159   : > { %v524_v35 = vrot.slane %v523_v34, 4 }
 0x15b   : > { %v525_v41 = vadd.f32 %v524_v35, %v523_v34 }
 0x15c   : > { %v412_v32 = vpop.xlane.xlu0 %411 }
 0x15d   : > { %v413_v33 = vrot.slane %v412_v32, 4  ;;  %v526_v49 = vrot.slane %v525_v41, 2 }
 0x15f   : > { %v414_v36 = vadd.f32 %v413_v33, %v412_v32  ;;  %v527_v60 = vadd.f32 %v526_v49, %v525_v41 }
 0x160   : > { %v421_v38 = vpop.xlane.xlu0 %420 }
 0x161   : > { %v415_v39 = vrot.slane %v414_v36, 2  ;;  %v422_v40 = vrot.slane %v421_v38, 4  ;;  %v528_v12 = vrot.slane %v527_v60, 1 }
 0x163   : > { %v423_v42 = vadd.f32 %v422_v40, %v421_v38  ;;  %v416_v43 = vadd.f32 %v415_v39, %v414_v36  ;;  %v529_v15 = vadd.f32 %v528_v12, %v527_v60 }
 0x164   : > { %v503_v45 = vpop.xlane.xlu0 %502 }
 0x165   : > { %v424_v46 = vrot.slane %v423_v42, 2  ;;  %v417_v47 = vrot.slane %v416_v43, 1  ;;  %v504_v48 = vrot.slane %v503_v45, 4 }
 0x167   : > { %v418_v50 = vadd.f32 %v417_v47, %v416_v43  ;;  %v425_v51 = vadd.f32 %v424_v46, %v423_v42  ;;  %v505_v52 = vadd.f32 %v504_v48, %v503_v45 }
 0x168   : > { %v478_v54 = vpop.xlane.xlu1 %477  ;;  %v545_v55 = vpop.xlane.xlu0 %544 }
 0x169   : > { %804 = vpush %v418_v50  ;;  %v426_v56 = vrot.slane %v425_v51, 1  ;;  %v479_v57 = vrot.slane %v478_v54, 4  ;;  %v506_v58 = vrot.slane %v505_v52, 2  ;;  %v546_v59 = vrot.slane %v545_v55, 4 }
 0x16b   : > { %v427_v61 = vadd.f32 %v426_v56, %v425_v51  ;;  %v480_v62 = vadd.f32 %v479_v57, %v478_v54  ;;  %v547_v63 = vadd.f32 %v546_v59, %v545_v55  ;;  %v507_v2 = vadd.f32 %v506_v58, %v505_v52 }
 0x16c   : > { %v557_v3 = vpop.xlane.xlu1 %556 }
 0x16d   : > { %806 = vpush %v427_v61  ;;  %v481_v6 = vrot.slane %v480_v62, 2  ;;  %v558_v7 = vrot.slane %v557_v3, 4  ;;  %v548_v8 = vrot.slane %v547_v63, 2  ;;  %v508_v9 = vrot.slane %v507_v2, 1 }
 0x16e   : > { %808 = vpush %v436_v1 }
 0x16f   : > { %v559_v0 = vadd.f32 %v558_v7, %v557_v3  ;;  %v549_v10 = vadd.f32 %v548_v8, %v547_v63  ;;  %v482_v11 = vadd.f32 %v481_v6, %v480_v62  ;;  %v509_v17 = vadd.f32 %v508_v9, %v507_v2 }
 0x171   : > { %v560_v13 = vrot.slane %v559_v0, 2  ;;  %v483_v14 = vrot.slane %v482_v11, 1  ;;  %v550_v16 = vrot.slane %v549_v10, 1 }
 0x173   : > { %v561_v18 = vadd.f32 %v560_v13, %v559_v0  ;;  %v484_v19 = vadd.f32 %v483_v14, %v482_v11  ;;  %v551_v20 = vadd.f32 %v550_v16, %v549_v10 }
 0x175   : > { %810 = vpush %v484_v19  ;;  %v562_v4 = vrot.slane %v561_v18, 1 }
 0x176   : > { %812 = vpush %v509_v17 }
 0x177   : > { %814 = vpush %v529_v15  ;;  %v563_v21 = vadd.f32 %v562_v4, %v561_v18 }
 0x178   : > { %816 = vpush %v551_v20 }
 0x179   : > { %818 = vpush %v563_v21 }
 0x19a   : > { %s805_s25 = spop %804 }
 0x19e   : > { %s807_s21 = spop %806 }
 0x19f   : > { %s809_s20 = spop %808  ;;  %s567_s16 = sadd.f32 %s807_s21, %s805_s25 }
 0x1a0   : > { %s569_s12 = smax.f32 %s1090_s15, %s809_s20  ;;  %s566_s14 = ssub.f32 0.0, %s807_s21 }
 0x1a1   : > { %v570_v5 = vstv %s569_s12  ;;  %s568_s28 = ssub.f32 0.0, %s567_s16  ;;  %p565_p10 = scmp.eq.f32.partialorder %s809_s20, 0.0 }
 0x1a2   : > { %897 = vrcp.f32 %v570_v5  ;;  %s1371_s21 = scvt.s32.f32 %s367_s29  ;;  %s626_s29 = scalar_lea.sflag [#allocation6], %s1307_s27 }
 0x1a6   : > { %s811_s11 = spop %810 }
 0x1a7   : > { %s813_s30 = spop %812  ;;  %s576_s7 = sadd.f32 1e-08, %s811_s11 }
 0x1a8   : > { %s1365_s17 = spop %814  ;;  %s578_s8 = sadd.f32 1e-08, %s813_s30 }
 0x1a9   : > { %s1367_s1 = spop %816  ;;  %s577_s26 = smul.f32 0.1, %s576_s7 }
 0x1aa   : > { %s819_s18 = spop %818  ;;  %s579_s25 = smul.f32 0.1, %s578_s8 }
 0x1ab   : > { %s582_s12 = sadd.f32 1e-08, %s819_s18  ;;  %s580_s3 = smul.f32 0.1, %s1365_s17 }
 0x1ac   : > { %s581_s20 = smul.f32 0.01, %s1367_s1  ;;  %s359_s7 = scalar_lea.vmem [#allocation12], %s1307_s27 }
 0x1ad   : > { %s1374_s13 = smul.f32 0.1, %s582_s12 }
 0x1ae   : > { %s610_s1 = smul.f32 %s580_s3, %s1371_s21 }
 0x1af   : > { %v898_v22 = vpop.eup %897 }
 0x1b0   : > { %820 = vpush %v898_v22  ;;  %v611_v33 = vstv %s610_s1 }
 0x1b1   : > { %v612_v38 = vsel %vm609_vm12, %v611_v33, 0.0 }
 0x1e1   : > { %s821_s19 = spop %820 }
 0x1e2   : > { %s573_s2 = smul.f32 %s821_s19, %s568_s28 }
 0x1e3   : > { %s605_s28 = smul.f32 %s579_s25, %s1371_s21 }
 0x1e4   : > { %s1465_s14 = smov (!%p565_p10, %s566_s14), %s573_s2  ;;  %s620_s19 = smul.f32 %s1374_s13, %s1371_s21 }
 0x1e5   : > { %s575_s22 = sadd.f32 1e-08, %s1465_s14  ;;  %s600_s14 = smul.f32 %s577_s26, %s1371_s21  ;;  %v606_v30 = vstv %s605_s28 }
 0x1e6   : > { %v607_v35 = vsel %vm604_vm11, %v606_v30, 0.0  ;;  %v621_v39 = vstv %s620_s19  ;;  %s638_s2 = sshll.u32 %s359_s7, 4  ;;  %s639_s2 = int_to_ptr.vmem [resolvable:$true] %s638_s2 }
 0x1e7   : > { %s584_s15 = sadd.f32 %s577_s26, %s575_s22  ;;  %s595_s16 = smul.f32 %s575_s22, %s1371_s21  ;;  %v601_v26 = vstv %s600_s14  ;;  %v622_v43 = vsel %vm619_vm14, %v621_v39, 0.0 }
 0x1e8   : > { %v602_v32 = vsel %vm599_vm10, %v601_v26, 0.0 }
 0x1e9   : > { %s585_s4 = sadd.f32 %s584_s15, %s579_s25  ;;  %v596_v25 = vstv %s595_s16  ;;  %s1011_s25 = scalar_lea.vmem %s639_s2, 16 }
 0x1ea   : > { %v597_v29 = vsel %vm594_vm9, %v596_v25, 0.0  ;;  %p1012_p3 = scmp.ne.s32.totalorder %s639_s2, %s1011_s25  ;;  %s1091_s15 = smov [#allocation12]  }
 0x1eb   : > { %s586_s11 = sadd.f32 %s585_s4, %s580_s3  ;;  %s615_s4 = smul.f32 %s581_s20, %s1371_s21 }
 0x1ec   : > { %s801_s3 = sshll.u32 %s1151_s0, 4  ;;  %p1013_p0 = pnand %p1012_p3, %p1455_p9 }
 0x1ed   : > { %s587_s30 = sadd.f32 %s586_s11, %s581_s20  ;;  %v616_v36 = vstv %s615_s4  ;;  %s636_s22 = scalar_lea.hbm %s1427_s6, %s801_s3 }
 0x1ee   : > { %v617_v41 = vsel %vm614_vm13, %v616_v36, 0.0  ;;  %p1014_p11 = pneg %p1013_p0  ;;  %s1015_s12 = sshll.u32 %s1091_s15, 4  ;;  %s1016_s12 = int_to_ptr.vmem [resolvable:$false] %s1015_s12 }
 0x1ef   : > { %s588_s17 = sadd.f32 %s587_s30, %s1374_s13  ;;  %s1017_s0 = scalar_lea.vmem %s1016_s12, 32 }
 0x1f0   : > { %p1018_p12 = scmp.lt.s32.totalorder %s639_s2, %s1016_s12  ;;  %p1019_p4 = scmp.lt.s32.totalorder %s1017_s0, %s1011_s25 }
 0x1f1   : > { %s590_s18 = smul.f32 %s588_s17, %s1371_s21 }
 0x1f2   : > { %p1020_p5 = por %p1019_p4, %p1018_p12 }
 0x1f3   : > { %v591_v27 = vstv %s590_s18 }
 0x1f4   : > { %v592_v28 = vsel %vm589_vm8, %v591_v27, 0.0  ;;  %p1021_p7 = pnand %p1020_p5, %p1014_p11 }
 0x1f5   : > { %v598_v31 = vadd.f32 %v597_v29, %v592_v28 }
 0x1f7   : > { %v603_v34 = vadd.f32 %v602_v32, %v598_v31 }
 0x1f9   : > { %v608_v37 = vadd.f32 %v607_v35, %v603_v34 }
 0x1fb   : > { %v613_v40 = vadd.f32 %v612_v38, %v608_v37 }
 0x1fd   : > { %v618_v42 = vadd.f32 %v617_v41, %v613_v40 }
 0x1ff   : > { %v623_v44 = vadd.f32 %v622_v43, %v618_v42 }
 0x201   : > { %624 = vst [vmem:[%s359_s7] sm:$0x1] %v623_v44 }
 0x202   : > { %1024 = shalt.err (!%p1021_p7)
}
 0x203   : > { %s1025_s21 = scalar_lea.hbm %s636_s22, 16  ;;  %s1029_s11 = scalar_lea.hbm %s1427_s6, 32 }
 0x204   : > { %p1026_p6 = scmp.ne.s32.totalorder %s636_s22, %s1025_s21  ;;  %p1030_p13 = scmp.lt.s32.totalorder %s636_s22, %s1427_s6 }
 0x205   : > { %p1031_p10 = scmp.lt.s32.totalorder %s1029_s11, %s1025_s21 }
 0x206   : > { %p1027_p8 = pnand %p1026_p6, %p1455_p9 }
 0x207   : > { %p1032_p1 = por %p1031_p10, %p1030_p13 }
 0x208   : > { %p1028_p2 = pneg %p1027_p8 }
 0x20a   : > { %p1033_p3 = pnand %p1032_p1, %p1028_p2 }
 0x20c   : > { %1036 = shalt.err (!%p1033_p3)
}
 0x20d   : > { %830 = dma.vmem_to_hbm [thread:$0]  (%p1455_p9), %s639_s2, 16, %s636_s22, %s626_s29  }
 0x20e PF: > { %s1456_s16 = sld [smem:[#allocation18_spill]]  ;;  %s650_s14 = sand.u32 1, %s1071_s23  }
 0x20f   : > { %p1457_p0 = scmp.ne.s32.totalorder %s1444_s10, 0  ;;  %s651_s17 = scalar_lea.sflag [#allocation6], %s650_s14 }
 0x214   : > { %p1458_p11 = scmp.ge.s32.totalorder %s1456_s16, 2 }
 0x216   : > { %p846_p12 = pnand %p1458_p11, %p1457_p0 }
 0x218   : > { %p847_p4 = pneg %p846_p12 }
 0x21a   : > { %1066 = dma.done.wait (%p847_p4), %s651_s17, 16  }
 0x21b   : > { %1068 = vsyncadd (%p847_p4), %s651_s17, 4294967280  ;;  %s1459_s26 = sld [smem:[#allocation19_spill]]  ;;  %s1462_s23 = smov %s1075_s24 }
 0x21c   : > { %s1460_s28 = sld [smem:[#allocation17_spill]] }
 0x21d   : > { %s1461_s25 = sld [smem:[#allocation20_spill]] }
 0x221   : > { %p26_p5 = scmp.ge.s32.totalorder %s1459_s26, 4  }
 0x222   : > { %s1463_s24 = smov %s1460_s28 }
 0x223   :  { %28 = sbr.rel (!%p26_p5) target bundleno = 15 (0xf), region = 125 }
 0x228   :  { %655 = vsyncpa [#allocation5], 1 }
 0x229   :  { %657 = vsyncpa [#allocation5 + $0x1], 1 }
 0x22a   :  { %658 = vsyncpa [#allocation8], 1 }
 0x22b   :  { %660 = vsyncpa [#allocation8 + $0x1], 1 }
 0x22c   :  { %661 = vsyncpa [#allocation11], 1 }
 0x22d   :  { %663 = vsyncpa [#allocation11 + $0x1], 1 }
 0x22e   :  { %664 = vsyncpa [#allocation6], 1 }
 0x22f   :  { %666 = vsyncpa [#allocation6 + $0x1], 1 }

</bundles_post_ra>
